<compile_context>
chip_gen: v6e
topology: v6e:2x2x1
jax: 0.10.0
libtpu: 0.0.40
codegen_flags: <defaults>
</compile_context>

<pallas_src>
import functools

import jax
import jax.numpy as jnp
from jax import lax
from jax.experimental import pallas as pl
from jax.experimental.pallas import tpu as pltpu

EPS = 1e-5
LANE = 128
VMEM_LIMIT = 48 * 1024 * 1024


def _round_up(v, m):
    return ((v + m - 1) // m) * m


def _choose_tiles(n_pad):
    """Pick (tile_m, tile_k) that exactly divide n_pad (a multiple of 128).

    tile_m is capped at n_pad // 2 when possible so the parallel row axis has
    >= 2 tiles to shard across v7x's two TensorCores.
    """
    def pick(cands, cap):
        for t in cands:
            if t <= cap and n_pad % t == 0:
                return t
        return 128  # n_pad is always a multiple of 128

    m_cap = max(n_pad // 2, 128)
    tile_m = pick((2048, 1536, 1024, 768, 512, 384, 256, 128), m_cap)
    tile_k = pick((512, 384, 256, 128), n_pad)
    return tile_m, tile_k


def _pad2(a, rows, cols):
    r, c = a.shape
    return jnp.pad(a.astype(jnp.float32), ((0, rows - r), (0, cols - c)))


# ---------------------------------------------------------------------------
# Fused GCN layer: (adj @ x) @ W' + deg*c + bias -> ReLU, plus fused next-layer
# BN partial stats and (optionally) fused global_add_pool partials.
# ---------------------------------------------------------------------------
def _gcn_layer_kernel(n_real, fuse_pool, *refs):
    if fuse_pool:
        (adj_ref, x_ref, w_ref, c_ref, deg_ref, b_ref, p_ref,
         out_ref, sum_ref, sq_ref, pool_ref, acc_ref) = refs
    else:
        (adj_ref, x_ref, w_ref, c_ref, deg_ref, b_ref,
         out_ref, sum_ref, sq_ref, acc_ref) = refs
        p_ref = pool_ref = None

    # Hoisted OUT of pl.when bodies (program_id inside a cond branch does not
    # lower on the interpret/CPU path).
    i = pl.program_id(0)
    k = pl.program_id(1)
    last_k = pl.num_programs(1) - 1
    tile_m = out_ref.shape[0]

    @pl.when(k == 0)
    def _():
        acc_ref[...] = jnp.zeros_like(acc_ref)

    # Inner loop is MXU-only: int8 adj -> bf16 in-register, x already bf16.
    acc_ref[...] += jnp.dot(adj_ref[...].astype(jnp.bfloat16), x_ref[...],
                            preferred_element_type=jnp.float32)

    @pl.when(k == last_k)
    def _():
        # Finalize once per row tile: apply the BN-folded weight, degree term,
        # bias and ReLU.
        h = jnp.dot(acc_ref[...].astype(jnp.bfloat16), w_ref[...],
                    preferred_element_type=jnp.float32)
        h = jnp.maximum(h + deg_ref[...] * c_ref[...] + b_ref[...], 0.0)
        # Zero padded node rows (they would otherwise be relu(bias)) so the
        # fused stats / pooling / next layer stay uncontaminated.
        rows = i * tile_m + lax.broadcasted_iota(jnp.int32, h.shape, 0)
        h = jnp.where(rows < n_real, h, 0.0)
        out_ref[...] = h.astype(out_ref.dtype)
        # Fused per-tile BN statistics for the next layer (reduced outside).
        sum_ref[...] = jnp.sum(h, axis=0, keepdims=True)[None]
        sq_ref[...] = jnp.sum(h * h, axis=0, keepdims=True)[None]
        if fuse_pool:
            # Fused global_add_pool partial: P_tile @ h in f32 (P is exact 0/1).
            pool_ref[...] = jnp.dot(p_ref[...], h,
                                    preferred_element_type=jnp.float32)[None]


def gcn_layer(adj_i8, x_bf16, w_fold, c_row, deg, bias_p, n_real,
              tile_m, tile_k, p_pad=None):
    n_pad = adj_i8.shape[0]
    f_pad = x_bf16.shape[1]
    h_pad = w_fold.shape[1]
    n_i = n_pad // tile_m
    fuse_pool = p_pad is not None
    kernel = functools.partial(_gcn_layer_kernel, n_real, fuse_pool)

    in_specs = [
        pl.BlockSpec((tile_m, tile_k), lambda i, k: (i, k)),   # adj tile (int8)
        pl.BlockSpec((tile_k, f_pad), lambda i, k: (k, 0)),    # x tile  (bf16)
        pl.BlockSpec((f_pad, h_pad), lambda i, k: (0, 0)),     # W' (bf16, resident)
        pl.BlockSpec((1, h_pad), lambda i, k: (0, 0)),         # c row
        pl.BlockSpec((tile_m, 1), lambda i, k: (i, 0)),        # degree column
        pl.BlockSpec((1, h_pad), lambda i, k: (0, 0)),         # bias
    ]
    inputs = [adj_i8, x_bf16, w_fold, c_row, deg, bias_p]
    out_shapes = [
        jax.ShapeDtypeStruct((n_pad, h_pad), jnp.bfloat16),    # activations
        jax.ShapeDtypeStruct((n_i, 1, h_pad), jnp.float32),    # per-tile col sums
        jax.ShapeDtypeStruct((n_i, 1, h_pad), jnp.float32),    # per-tile col sum-sq
    ]
    out_specs = [
        pl.BlockSpec((tile_m, h_pad), lambda i, k: (i, 0)),
        pl.BlockSpec((1, 1, h_pad), lambda i, k: (i, 0, 0)),
        pl.BlockSpec((1, 1, h_pad), lambda i, k: (i, 0, 0)),
    ]
    if fuse_pool:
        bg = p_pad.shape[0]
        in_specs.append(pl.BlockSpec((bg, tile_m), lambda i, k: (0, i)))
        inputs.append(p_pad)
        out_shapes.append(jax.ShapeDtypeStruct((n_i, bg, h_pad), jnp.float32))
        out_specs.append(pl.BlockSpec((1, bg, h_pad), lambda i, k: (i, 0, 0)))

    return pl.pallas_call(
        kernel,
        out_shape=tuple(out_shapes),
        grid_spec=pltpu.PrefetchScalarGridSpec(
            num_scalar_prefetch=0,
            grid=(n_i, n_pad // tile_k),
            in_specs=in_specs,
            out_specs=out_specs,
            scratch_shapes=[pltpu.VMEM((tile_m, f_pad), jnp.float32)],
        ),
        compiler_params=pltpu.CompilerParams(
            dimension_semantics=("parallel", "arbitrary"),
            vmem_limit_bytes=VMEM_LIMIT),
    )(*inputs)


# ---------------------------------------------------------------------------
# Head: BN -> FC+ReLU -> BN -> classifier -> log_softmax on the pooled [B, H]
# buffer (pooling itself was fused into the last GCN layer).
# ---------------------------------------------------------------------------
def _head_kernel(num_classes,
                 pooled_ref, g_fc_ref, b_fc_ref, w_fc_ref, bias_fc_ref,
                 g_h_ref, b_h_ref, w_cls_ref, bias_cls_ref, out_ref):
    pooled = pooled_ref[...]
    mean = jnp.mean(pooled, axis=0, keepdims=True)
    var = jnp.maximum(jnp.mean(pooled * pooled, axis=0, keepdims=True)
                      - mean * mean, 0.0)
    h = (pooled - mean) * lax.rsqrt(var + EPS) * g_fc_ref[...] + b_fc_ref[...]
    h = jnp.dot(h, w_fc_ref[...], preferred_element_type=jnp.float32) + bias_fc_ref[...]
    h = jnp.maximum(h, 0.0)
    m2 = jnp.mean(h, axis=0, keepdims=True)
    v2 = jnp.maximum(jnp.mean(h * h, axis=0, keepdims=True) - m2 * m2, 0.0)
    h2 = (h - m2) * lax.rsqrt(v2 + EPS) * g_h_ref[...] + b_h_ref[...]
    logits = jnp.dot(h2, w_cls_ref[...], preferred_element_type=jnp.float32) \
             + bias_cls_ref[...]
    cols = lax.broadcasted_iota(jnp.int32, logits.shape, 1)
    logits = jnp.where(cols < num_classes, logits, -1e30)
    mx = jnp.max(logits, axis=-1, keepdims=True)
    s = logits - mx
    out_ref[...] = s - jnp.log(jnp.sum(jnp.exp(s), axis=-1, keepdims=True))


def head(pooled, g_fc, b_fc, w_fc, bias_fc, g_h, b_h, w_cls, bias_cls, num_classes):
    bg = pooled.shape[0]
    c_pad = w_cls.shape[1]
    kernel = functools.partial(_head_kernel, num_classes)
    return pl.pallas_call(
        kernel,
        out_shape=jax.ShapeDtypeStruct((bg, c_pad), jnp.float32),
        compiler_params=pltpu.CompilerParams(vmem_limit_bytes=VMEM_LIMIT),
    )(pooled, g_fc, b_fc, w_fc, bias_fc, g_h, b_h, w_cls, bias_cls)


# ---------------------------------------------------------------------------
# Parameters & forward
# ---------------------------------------------------------------------------
def init_params(key, num_features, hidden, num_classes, num_conv_layers=3):
    ks = iter(jax.random.split(key, 32))
    scale = 0.1

    def mat(shape):
        return (scale * jax.random.normal(next(ks), shape)).astype(jnp.float32)

    def bn(dim):
        # nn.init: weight=1, bias=0.0001
        return (jnp.ones((1, dim), jnp.float32),
                jnp.full((1, dim), 1e-4, jnp.float32))

    params = {}
    params["bn_feat"] = bn(num_features)
    params["conv_feat"] = (mat((num_features, hidden)), mat((1, hidden)))
    params["bns_conv"] = [bn(hidden) for _ in range(num_conv_layers)]
    params["convs"] = [(mat((hidden, hidden)), mat((1, hidden)))
                       for _ in range(num_conv_layers)]
    params["bn_fc"] = bn(hidden)                 # bns_fc[0]  (num_fc_layers=2)
    params["lin_fc"] = (mat((hidden, hidden)), mat((1, hidden)))
    params["bn_hidden"] = bn(hidden)
    params["lin_class"] = (mat((hidden, num_classes)), mat((1, num_classes)))
    return params


def res_gcn_adj_forward(params, x, adj, pool_mat):
    n, f_in = x.shape
    hidden = params["conv_feat"][0].shape[1]
    ncls = params["lin_class"][0].shape[1]
    bg = pool_mat.shape[0]

    n_pad = _round_up(n, LANE)                 # pad to 128, not the tile size
    tile_m, tile_k = _choose_tiles(n_pad)
    f_pad = _round_up(f_in, LANE)
    h_pad = _round_up(hidden, LANE)
    c_pad = _round_up(ncls, LANE)

    adj_i8 = _pad2(adj, n_pad, n_pad).astype(jnp.int8)         # 0/1 -> exact int8
    deg = jnp.pad(jnp.sum(adj.astype(jnp.float32), axis=1),
                  (0, n_pad - n)).reshape(n_pad, 1)            # adj @ 1 (once)
    x_bf = _pad2(x, n_pad, f_pad).astype(jnp.bfloat16)
    p_pad = _pad2(pool_mat, bg, n_pad)

    def fold(mean_p, var_p, gamma, beta, w, bias, fp, hp):
        """Fold training-mode BN into the conv weight: W', c, padded bias."""
        gp = _pad2(gamma, 1, fp)
        bp = _pad2(beta, 1, fp)                 # padded channels -> 0 (inert)
        wp = _pad2(w, fp, hp)
        biasp = _pad2(bias, 1, hp)
        istd = lax.rsqrt(var_p + EPS)
        scale = gp * istd                       # padded cols: gamma=0 -> scale=0
        shift = bp - mean_p * scale
        w_fold = (wp * scale.reshape(fp, 1)).astype(jnp.bfloat16)
        c = jnp.dot(shift, wp)                  # (1, hp) f32
        return w_fold, c, biasp

    # ---- layer 0: BN stats of the raw input features (single cheap jnp pass)
    mean0 = _pad2(jnp.mean(x, axis=0, keepdims=True), 1, f_pad)
    var0 = _pad2(jnp.maximum(jnp.mean(x * x, axis=0, keepdims=True)
                             - jnp.mean(x, axis=0, keepdims=True) ** 2, 0.0),
                 1, f_pad)
    g, b = params["bn_feat"]
    w, bias = params["conv_feat"]
    w_f, c_r, bias_p = fold(mean0, var0, g, b, w, bias, f_pad, h_pad)
    h_act, s1, s2 = gcn_layer(adj_i8, x_bf, w_f, c_r, deg, bias_p, n,
                              tile_m, tile_k)

    # ---- conv stack (residual=False); BN stats come fused from previous layer
    num_conv = len(params["convs"])
    pooled_parts = None
    for li, ((g, b), (w, bias)) in enumerate(zip(params["bns_conv"],
                                                 params["convs"])):
        mean = (jnp.sum(s1, axis=(0, 1)) / n).reshape(1, h_pad)
        ex2 = (jnp.sum(s2, axis=(0, 1)) / n).reshape(1, h_pad)
        var = jnp.maximum(ex2 - mean * mean, 0.0)
        w_f, c_r, bias_p = fold(mean, var, g, b, w, bias, h_pad, h_pad)
        if li == num_conv - 1:
            h_act, s1, s2, pooled_parts = gcn_layer(
                adj_i8, h_act, w_f, c_r, deg, bias_p, n, tile_m, tile_k,
                p_pad=p_pad)
        else:
            h_act, s1, s2 = gcn_layer(adj_i8, h_act, w_f, c_r, deg, bias_p, n,
                                      tile_m, tile_k)

    pooled = jnp.sum(pooled_parts, axis=0)      # (bg, h_pad) f32 global_add_pool

    # ---- head
    g_fc, b_fc = params["bn_fc"]
    w_fc, bias_fc = params["lin_fc"]
    g_h, b_h = params["bn_hidden"]
    w_cls, bias_cls = params["lin_class"]
    out = head(pooled,
               _pad2(g_fc, 1, h_pad), _pad2(b_fc, 1, h_pad),
               _pad2(w_fc, h_pad, h_pad), _pad2(bias_fc, 1, h_pad),
               _pad2(g_h, 1, h_pad), _pad2(b_h, 1, h_pad),
               _pad2(w_cls, h_pad, c_pad), _pad2(bias_cls, 1, c_pad),
               ncls)
    return out[:, :ncls]


forward_jit = jax.jit(res_gcn_adj_forward)


# ---------------------------------------------------------------------------
# Pure-JAX reference mirroring the kernel arithmetic (same BN fold and bf16
# MXU casts) for a tight self-check.
# ---------------------------------------------------------------------------
def reference_forward(params, x, adj, pool_mat):
    n = x.shape[0]
    adj_bf = adj.astype(jnp.int8).astype(jnp.bfloat16)        # 0/1 -> exact
    deg = jnp.sum(adj.astype(jnp.float32), axis=1, keepdims=True)

    def fold(mean, var, gamma, beta, w):
        istd = lax.rsqrt(var + EPS)
        scale = gamma * istd
        shift = beta - mean * scale
        return (w * scale.reshape(-1, 1)).astype(jnp.bfloat16), jnp.dot(shift, w)

    def layer(h_f32, mean, var, gamma, beta, w, bias):
        w_fold, c = fold(mean, var, gamma, beta, w)
        acc = jnp.dot(adj_bf, h_f32.astype(jnp.bfloat16),
                      preferred_element_type=jnp.float32)
        out = jnp.dot(acc.astype(jnp.bfloat16), w_fold,
                      preferred_element_type=jnp.float32)
        return jnp.maximum(out + deg * c + bias, 0.0)

    def stats(v):
        mean = jnp.sum(v, axis=0, keepdims=True) / n
        ex2 = jnp.sum(v * v, axis=0, keepdims=True) / n
        return mean, jnp.maximum(ex2 - mean * mean, 0.0)

    g, b = params["bn_feat"]; w, bias = params["conv_feat"]
    mean, var = stats(x)
    h = layer(x, mean, var, g, b, w, bias)
    for (g, b), (w, bias) in zip(params["bns_conv"], params["convs"]):
        mean, var = stats(h)
        h = layer(h, mean, var, g, b, w, bias)

    pooled = jnp.dot(pool_mat, h)               # f32 global_add_pool

    def bn(v, gamma, beta):
        m = jnp.mean(v, axis=0, keepdims=True)
        vv = jnp.maximum(jnp.mean(v * v, axis=0, keepdims=True) - m * m, 0.0)
        return (v - m) * lax.rsqrt(vv + EPS) * gamma + beta

    g_fc, b_fc = params["bn_fc"]; w_fc, bias_fc = params["lin_fc"]
    h2 = jnp.maximum(jnp.dot(bn(pooled, g_fc, b_fc), w_fc) + bias_fc, 0.0)
    g_h, b_h = params["bn_hidden"]; w_cls, bias_cls = params["lin_class"]
    logits = jnp.dot(bn(h2, g_h, b_h), w_cls) + bias_cls
    return jax.nn.log_softmax(logits, axis=-1)


if __name__ == "__main__":
    # Small synthetic graph batch: 2 graphs x 8 nodes = 16 nodes,
    # 8 input features, hidden=32, 4 classes.
    N_NODES = 16
    NUM_FEAT = 8
    HIDDEN = 32
    NUM_CLASSES = 4
    B_GRAPHS = 2

    key = jax.random.PRNGKey(0)
    k_x, k_adj, k_par = jax.random.split(key, 3)

    x = jax.random.normal(k_x, (N_NODES, NUM_FEAT), dtype=jnp.float32)

    # batch assignment: first 8 nodes -> graph 0, last 8 -> graph 1
    batch = jnp.concatenate([jnp.zeros(8, jnp.int32), jnp.ones(8, jnp.int32)])
    pool_mat = jax.nn.one_hot(batch, B_GRAPHS, dtype=jnp.float32).T  # [B, N]

    # dense block-diagonal 0/1 adjacency (matches the unnormalized
    # sparse_coo_tensor of ones built in forward())
    rand_adj = jax.random.bernoulli(k_adj, 0.3, (N_NODES, N_NODES)).astype(jnp.float32)
    block_mask = (batch[:, None] == batch[None, :]).astype(jnp.float32)
    adj = rand_adj * block_mask

    params = init_params(k_par, NUM_FEAT, HIDDEN, NUM_CLASSES)

    out = forward_jit(params, x, adj, pool_mat)
    out = jax.block_until_ready(out)

    assert out.shape == (B_GRAPHS, NUM_CLASSES)
    # log_softmax rows should sum to ~1 in prob space
    assert jnp.allclose(jnp.sum(jnp.exp(out), axis=-1), 1.0, atol=1e-4)

    ref = jax.block_until_ready(reference_forward(params, x, adj, pool_mat))
    max_diff = float(jnp.max(jnp.abs(out - ref)))
    assert max_diff < 2e-2, f"kernel vs reference max diff too large: {max_diff}"

    print("KERNEL_OK")
</pallas_src>

<mosaic_0001>
module attributes {stable_mosaic.version = 11 : i64} {
  func.func @_gcn_layer_kernel(%arg0: i32, %arg1: i32, %arg2: memref<128x128xi8, #tpu.memory_space<vmem>>, %arg3: memref<128x128xbf16, #tpu.memory_space<vmem>>, %arg4: memref<128x128xbf16, #tpu.memory_space<vmem>>, %arg5: memref<1x128xf32, #tpu.memory_space<vmem>>, %arg6: memref<128x1xf32, #tpu.memory_space<vmem>>, %arg7: memref<1x128xf32, #tpu.memory_space<vmem>>, %arg8: memref<128x128xbf16, #tpu.memory_space<vmem>>, %arg9: memref<1x1x128xf32, #tpu.memory_space<vmem>>, %arg10: memref<1x1x128xf32, #tpu.memory_space<vmem>>, %arg11: memref<128x128xf32, #tpu.memory_space<vmem>>) attributes {dimension_semantics = [#tpu.dimension_semantics<parallel>, #tpu.dimension_semantics<arbitrary>], iteration_bounds = array<i64: 1, 1>, scalar_prefetch = 0 : i64, scratch_operands = 1 : i64, tpu.core_type = #tpu.core_type<tc>, window_params = [{transform_indices = @transform_0, window_bounds = array<i64: 128, 128>}, {transform_indices = @transform_1, window_bounds = array<i64: 128, 128>}, {pipeline_mode = #tpu.pipeline_mode<synchronous>, transform_indices = @transform_2, window_bounds = array<i64: 128, 128>}, {pipeline_mode = #tpu.pipeline_mode<synchronous>, transform_indices = @transform_3, window_bounds = array<i64: 1, 128>}, {transform_indices = @transform_4, window_bounds = array<i64: 128, 1>}, {pipeline_mode = #tpu.pipeline_mode<synchronous>, transform_indices = @transform_5, window_bounds = array<i64: 1, 128>}, {transform_indices = @transform_6, window_bounds = array<i64: 128, 128>}, {transform_indices = @transform_7, window_bounds = array<i64: 1, 1, 128>}, {transform_indices = @transform_8, window_bounds = array<i64: 1, 1, 128>}]} {
    %c0_i32 = arith.constant 0 : i32
    %0 = arith.cmpi eq, %arg1, %c0_i32 : i32
    %1 = arith.extui %0 : i1 to i32
    %c0_i32_0 = arith.constant 0 : i32
    %2 = arith.cmpi ne, %1, %c0_i32_0 : i32
    scf.if %2 {
      %cst_10 = arith.constant 0.000000e+00 : f32
      %13 = vector.broadcast %cst_10 : f32 to vector<128x128xf32>
      %c0_11 = arith.constant 0 : index
      %c0_12 = arith.constant 0 : index
      %14 = vector.load %arg11[%c0_11, %c0_12] : memref<128x128xf32, #tpu.memory_space<vmem>>, vector<128x128xf32>
      tpu.vector_store %arg11[%c0_11, %c0_12], %13 {strides = array<i32>} : memref<128x128xf32, #tpu.memory_space<vmem>>, vector<128x128xf32>,
    } else {
    }
    %c0 = arith.constant 0 : index
    %c0_1 = arith.constant 0 : index
    %3 = vector.load %arg11[%c0, %c0_1] : memref<128x128xf32, #tpu.memory_space<vmem>>, vector<128x128xf32>
    %c0_2 = arith.constant 0 : index
    %c0_3 = arith.constant 0 : index
    %4 = vector.load %arg2[%c0_2, %c0_3] : memref<128x128xi8, #tpu.memory_space<vmem>>, vector<128x128xi8>
    %5 = arith.sitofp %4 : vector<128x128xi8> to vector<128x128xbf16>
    %c0_4 = arith.constant 0 : index
    %c0_5 = arith.constant 0 : index
    %6 = vector.load %arg3[%c0_4, %c0_5] : memref<128x128xbf16, #tpu.memory_space<vmem>>, vector<128x128xbf16>
    %cst = arith.constant dense<0.000000e+00> : vector<128x128xf32>
    %7 = tpu.matmul %5, %6, %cst {dimension_numbers = #tpu.dot_dimension_numbers<[1], [0], [0], [1], [0, 0, 1, 1], [], []>} : vector<128x128xbf16>, vector<128x128xbf16>, vector<128x128xf32> -> vector<128x128xf32>
    %8 = arith.addf %3, %7 : vector<128x128xf32>
    %c0_6 = arith.constant 0 : index
    %c0_7 = arith.constant 0 : index
    %9 = vector.load %arg11[%c0_6, %c0_7] : memref<128x128xf32, #tpu.memory_space<vmem>>, vector<128x128xf32>
    tpu.vector_store %arg11[%c0_6, %c0_7], %8 {strides = array<i32>} : memref<128x128xf32, #tpu.memory_space<vmem>>, vector<128x128xf32>,
    %c0_i32_8 = arith.constant 0 : i32
    %10 = arith.cmpi eq, %arg1, %c0_i32_8 : i32
    %11 = arith.extui %10 : i1 to i32
    %c0_i32_9 = arith.constant 0 : i32
    %12 = arith.cmpi ne, %11, %c0_i32_9 : i32
    scf.if %12 {
      %c0_10 = arith.constant 0 : index
      %c0_11 = arith.constant 0 : index
      %13 = vector.load %arg11[%c0_10, %c0_11] : memref<128x128xf32, #tpu.memory_space<vmem>>, vector<128x128xf32>
      %14 = arith.truncf %13 : vector<128x128xf32> to vector<128x128xbf16>
      %c0_12 = arith.constant 0 : index
      %c0_13 = arith.constant 0 : index
      %15 = vector.load %arg4[%c0_12, %c0_13] : memref<128x128xbf16, #tpu.memory_space<vmem>>, vector<128x128xbf16>
      %cst_14 = arith.constant dense<0.000000e+00> : vector<128x128xf32>
      %16 = tpu.matmul %14, %15, %cst_14 {dimension_numbers = #tpu.dot_dimension_numbers<[1], [0], [0], [1], [0, 0, 1, 1], [], []>} : vector<128x128xbf16>, vector<128x128xbf16>, vector<128x128xf32> -> vector<128x128xf32>
      %c0_15 = arith.constant 0 : index
      %c0_16 = arith.constant 0 : index
      %17 = vector.load %arg6[%c0_15, %c0_16] : memref<128x1xf32, #tpu.memory_space<vmem>>, vector<128x1xf32>
      %c0_17 = arith.constant 0 : index
      %c0_18 = arith.constant 0 : index
      %18 = vector.load %arg5[%c0_17, %c0_18] : memref<1x128xf32, #tpu.memory_space<vmem>>, vector<1x128xf32>
      %19 = vector.broadcast %17 : vector<128x1xf32> to vector<128x128xf32>
      %20 = vector.broadcast %18 : vector<1x128xf32> to vector<128x128xf32>
      %21 = arith.mulf %19, %20 : vector<128x128xf32>
      %22 = arith.addf %16, %21 : vector<128x128xf32>
      %c0_19 = arith.constant 0 : index
      %c0_20 = arith.constant 0 : index
      %23 = vector.load %arg7[%c0_19, %c0_20] : memref<1x128xf32, #tpu.memory_space<vmem>>, vector<1x128xf32>
      %24 = vector.broadcast %23 : vector<1x128xf32> to vector<128x128xf32>
      %25 = arith.addf %22, %24 : vector<128x128xf32>
      %cst_21 = arith.constant 0.000000e+00 : f32
      %26 = vector.broadcast %cst_21 : f32 to vector<128x128xf32>
      %27 = arith.maximumf %25, %26 : vector<128x128xf32>
      %c128_i32 = arith.constant 128 : i32
      %28 = arith.muli %arg0, %c128_i32 : i32
      %29 = tpu.iota {dimensions = array<i32: 0>} : vector<128x128xi32>
      %30 = vector.broadcast %28 : i32 to vector<128x128xi32>
      %31 = arith.addi %30, %29 : vector<128x128xi32>
      %c16_i32 = arith.constant 16 : i32
      %32 = vector.broadcast %c16_i32 : i32 to vector<128x128xi32>
      %33 = arith.cmpi slt, %31, %32 : vector<128x128xi32>
      %cst_22 = arith.constant 0.000000e+00 : f32
      %34 = vector.broadcast %cst_22 : f32 to vector<128x128xf32>
      %35 = arith.select %33, %27, %34 : vector<128x128xi1>, vector<128x128xf32>
      %36 = arith.truncf %35 : vector<128x128xf32> to vector<128x128xbf16>
      %c0_23 = arith.constant 0 : index
      %c0_24 = arith.constant 0 : index
      %37 = vector.load %arg8[%c0_23, %c0_24] : memref<128x128xbf16, #tpu.memory_space<vmem>>, vector<128x128xbf16>
      tpu.vector_store %arg8[%c0_23, %c0_24], %36 {strides = array<i32>} : memref<128x128xbf16, #tpu.memory_space<vmem>>, vector<128x128xbf16>,
      %cst_25 = arith.constant dense<0.000000e+00> : vector<128xf32>
      %38 = vector.multi_reduction <add>, %35, %cst_25 [0] : vector<128x128xf32> to vector<128xf32>
      %39 = vector.shape_cast %38 : vector<128xf32> to vector<1x128xf32>
      %40 = vector.shape_cast %39 : vector<1x128xf32> to vector<1x1x128xf32>
      %c0_26 = arith.constant 0 : index
      %c0_27 = arith.constant 0 : index
      %c0_28 = arith.constant 0 : index
      %41 = vector.load %arg9[%c0_26, %c0_27, %c0_28] : memref<1x1x128xf32, #tpu.memory_space<vmem>>, vector<1x1x128xf32>
      tpu.vector_store %arg9[%c0_26, %c0_27, %c0_28], %40 {strides = array<i32>} : memref<1x1x128xf32, #tpu.memory_space<vmem>>, vector<1x1x128xf32>,
      %42 = arith.mulf %35, %35 : vector<128x128xf32>
      %cst_29 = arith.constant dense<0.000000e+00> : vector<128xf32>
      %43 = vector.multi_reduction <add>, %42, %cst_29 [0] : vector<128x128xf32> to vector<128xf32>
      %44 = vector.shape_cast %43 : vector<128xf32> to vector<1x128xf32>
      %45 = vector.shape_cast %44 : vector<1x128xf32> to vector<1x1x128xf32>
      %c0_30 = arith.constant 0 : index
      %c0_31 = arith.constant 0 : index
      %c0_32 = arith.constant 0 : index
      %46 = vector.load %arg10[%c0_30, %c0_31, %c0_32] : memref<1x1x128xf32, #tpu.memory_space<vmem>>, vector<1x1x128xf32>
      tpu.vector_store %arg10[%c0_30, %c0_31, %c0_32], %45 {strides = array<i32>} : memref<1x1x128xf32, #tpu.memory_space<vmem>>, vector<1x1x128xf32>,
    } else {
    }
    return
  }
  func.func @transform_0(%arg0: i32, %arg1: i32) -> (i32, i32) {
    %c0_i32 = arith.constant 0 : i32
    return %arg0, %arg1 : i32, i32
  }
  func.func @transform_1(%arg0: i32, %arg1: i32) -> (i32, i32) {
    %c0_i32 = arith.constant 0 : i32
    %c0_i32_0 = arith.constant 0 : i32
    return %arg1, %c0_i32 : i32, i32
  }
  func.func @transform_2(%arg0: i32, %arg1: i32) -> (i32, i32) {
    %c0_i32 = arith.constant 0 : i32
    %c0_i32_0 = arith.constant 0 : i32
    %c0_i32_1 = arith.constant 0 : i32
    return %c0_i32, %c0_i32_0 : i32, i32
  }
  func.func @transform_3(%arg0: i32, %arg1: i32) -> (i32, i32) {
    %c0_i32 = arith.constant 0 : i32
    %c0_i32_0 = arith.constant 0 : i32
    %c0_i32_1 = arith.constant 0 : i32
    return %c0_i32, %c0_i32_0 : i32, i32
  }
  func.func @transform_4(%arg0: i32, %arg1: i32) -> (i32, i32) {
    %c0_i32 = arith.constant 0 : i32
    %c0_i32_0 = arith.constant 0 : i32
    return %arg0, %c0_i32 : i32, i32
  }
  func.func @transform_5(%arg0: i32, %arg1: i32) -> (i32, i32) {
    %c0_i32 = arith.constant 0 : i32
    %c0_i32_0 = arith.constant 0 : i32
    %c0_i32_1 = arith.constant 0 : i32
    return %c0_i32, %c0_i32_0 : i32, i32
  }
  func.func @transform_6(%arg0: i32, %arg1: i32) -> (i32, i32) {
    %c0_i32 = arith.constant 0 : i32
    %c0_i32_0 = arith.constant 0 : i32
    return %arg0, %c0_i32 : i32, i32
  }
  func.func @transform_7(%arg0: i32, %arg1: i32) -> (i32, i32, i32) {
    %c0_i32 = arith.constant 0 : i32
    %c0_i32_0 = arith.constant 0 : i32
    %c0_i32_1 = arith.constant 0 : i32
    return %arg0, %c0_i32, %c0_i32_0 : i32, i32, i32
  }
  func.func @transform_8(%arg0: i32, %arg1: i32) -> (i32, i32, i32) {
    %c0_i32 = arith.constant 0 : i32
    %c0_i32_0 = arith.constant 0 : i32
    %c0_i32_1 = arith.constant 0 : i32
    return %arg0, %c0_i32, %c0_i32_0 : i32, i32, i32
  }
}

module attributes {stable_mosaic.version = 11 : i64} {
  func.func @_gcn_layer_kernel(%arg0: i32, %arg1: i32, %arg2: memref<128x128xi8, #tpu.memory_space<vmem>>, %arg3: memref<128x128xbf16, #tpu.memory_space<vmem>>, %arg4: memref<128x128xbf16, #tpu.memory_space<vmem>>, %arg5: memref<1x128xf32, #tpu.memory_space<vmem>>, %arg6: memref<128x1xf32, #tpu.memory_space<vmem>>, %arg7: memref<1x128xf32, #tpu.memory_space<vmem>>, %arg8: memref<2x128xf32, #tpu.memory_space<vmem>>, %arg9: memref<128x128xbf16, #tpu.memory_space<vmem>>, %arg10: memref<1x1x128xf32, #tpu.memory_space<vmem>>, %arg11: memref<1x1x128xf32, #tpu.memory_space<vmem>>, %arg12: memref<1x2x128xf32, #tpu.memory_space<vmem>>, %arg13: memref<128x128xf32, #tpu.memory_space<vmem>>) attributes {dimension_semantics = [#tpu.dimension_semantics<parallel>, #tpu.dimension_semantics<arbitrary>], iteration_bounds = array<i64: 1, 1>, scalar_prefetch = 0 : i64, scratch_operands = 1 : i64, tpu.core_type = #tpu.core_type<tc>, window_params = [{transform_indices = @transform_0, window_bounds = array<i64: 128, 128>}, {transform_indices = @transform_1, window_bounds = array<i64: 128, 128>}, {pipeline_mode = #tpu.pipeline_mode<synchronous>, transform_indices = @transform_2, window_bounds = array<i64: 128, 128>}, {pipeline_mode = #tpu.pipeline_mode<synchronous>, transform_indices = @transform_3, window_bounds = array<i64: 1, 128>}, {transform_indices = @transform_4, window_bounds = array<i64: 128, 1>}, {pipeline_mode = #tpu.pipeline_mode<synchronous>, transform_indices = @transform_5, window_bounds = array<i64: 1, 128>}, {transform_indices = @transform_6, window_bounds = array<i64: 2, 128>}, {transform_indices = @transform_7, window_bounds = array<i64: 128, 128>}, {transform_indices = @transform_8, window_bounds = array<i64: 1, 1, 128>}, {transform_indices = @transform_9, window_bounds = array<i64: 1, 1, 128>}, {transform_indices = @transform_10, window_bounds = array<i64: 1, 2, 128>}]} {
    %c0_i32 = arith.constant 0 : i32
    %0 = arith.cmpi eq, %arg1, %c0_i32 : i32
    %1 = arith.extui %0 : i1 to i32
    %c0_i32_0 = arith.constant 0 : i32
    %2 = arith.cmpi ne, %1, %c0_i32_0 : i32
    scf.if %2 {
      %cst_10 = arith.constant 0.000000e+00 : f32
      %13 = vector.broadcast %cst_10 : f32 to vector<128x128xf32>
      %c0_11 = arith.constant 0 : index
      %c0_12 = arith.constant 0 : index
      %14 = vector.load %arg13[%c0_11, %c0_12] : memref<128x128xf32, #tpu.memory_space<vmem>>, vector<128x128xf32>
      tpu.vector_store %arg13[%c0_11, %c0_12], %13 {strides = array<i32>} : memref<128x128xf32, #tpu.memory_space<vmem>>, vector<128x128xf32>,
    } else {
    }
    %c0 = arith.constant 0 : index
    %c0_1 = arith.constant 0 : index
    %3 = vector.load %arg13[%c0, %c0_1] : memref<128x128xf32, #tpu.memory_space<vmem>>, vector<128x128xf32>
    %c0_2 = arith.constant 0 : index
    %c0_3 = arith.constant 0 : index
    %4 = vector.load %arg2[%c0_2, %c0_3] : memref<128x128xi8, #tpu.memory_space<vmem>>, vector<128x128xi8>
    %5 = arith.sitofp %4 : vector<128x128xi8> to vector<128x128xbf16>
    %c0_4 = arith.constant 0 : index
    %c0_5 = arith.constant 0 : index
    %6 = vector.load %arg3[%c0_4, %c0_5] : memref<128x128xbf16, #tpu.memory_space<vmem>>, vector<128x128xbf16>
    %cst = arith.constant dense<0.000000e+00> : vector<128x128xf32>
    %7 = tpu.matmul %5, %6, %cst {dimension_numbers = #tpu.dot_dimension_numbers<[1], [0], [0], [1], [0, 0, 1, 1], [], []>} : vector<128x128xbf16>, vector<128x128xbf16>, vector<128x128xf32> -> vector<128x128xf32>
    %8 = arith.addf %3, %7 : vector<128x128xf32>
    %c0_6 = arith.constant 0 : index
    %c0_7 = arith.constant 0 : index
    %9 = vector.load %arg13[%c0_6, %c0_7] : memref<128x128xf32, #tpu.memory_space<vmem>>, vector<128x128xf32>
    tpu.vector_store %arg13[%c0_6, %c0_7], %8 {strides = array<i32>} : memref<128x128xf32, #tpu.memory_space<vmem>>, vector<128x128xf32>,
    %c0_i32_8 = arith.constant 0 : i32
    %10 = arith.cmpi eq, %arg1, %c0_i32_8 : i32
    %11 = arith.extui %10 : i1 to i32
    %c0_i32_9 = arith.constant 0 : i32
    %12 = arith.cmpi ne, %11, %c0_i32_9 : i32
    scf.if %12 {
      %c0_10 = arith.constant 0 : index
      %c0_11 = arith.constant 0 : index
      %13 = vector.load %arg13[%c0_10, %c0_11] : memref<128x128xf32, #tpu.memory_space<vmem>>, vector<128x128xf32>
      %14 = arith.truncf %13 : vector<128x128xf32> to vector<128x128xbf16>
      %c0_12 = arith.constant 0 : index
      %c0_13 = arith.constant 0 : index
      %15 = vector.load %arg4[%c0_12, %c0_13] : memref<128x128xbf16, #tpu.memory_space<vmem>>, vector<128x128xbf16>
      %cst_14 = arith.constant dense<0.000000e+00> : vector<128x128xf32>
      %16 = tpu.matmul %14, %15, %cst_14 {dimension_numbers = #tpu.dot_dimension_numbers<[1], [0], [0], [1], [0, 0, 1, 1], [], []>} : vector<128x128xbf16>, vector<128x128xbf16>, vector<128x128xf32> -> vector<128x128xf32>
      %c0_15 = arith.constant 0 : index
      %c0_16 = arith.constant 0 : index
      %17 = vector.load %arg6[%c0_15, %c0_16] : memref<128x1xf32, #tpu.memory_space<vmem>>, vector<128x1xf32>
      %c0_17 = arith.constant 0 : index
      %c0_18 = arith.constant 0 : index
      %18 = vector.load %arg5[%c0_17, %c0_18] : memref<1x128xf32, #tpu.memory_space<vmem>>, vector<1x128xf32>
      %19 = vector.broadcast %17 : vector<128x1xf32> to vector<128x128xf32>
      %20 = vector.broadcast %18 : vector<1x128xf32> to vector<128x128xf32>
      %21 = arith.mulf %19, %20 : vector<128x128xf32>
      %22 = arith.addf %16, %21 : vector<128x128xf32>
      %c0_19 = arith.constant 0 : index
      %c0_20 = arith.constant 0 : index
      %23 = vector.load %arg7[%c0_19, %c0_20] : memref<1x128xf32, #tpu.memory_space<vmem>>, vector<1x128xf32>
      %24 = vector.broadcast %23 : vector<1x128xf32> to vector<128x128xf32>
      %25 = arith.addf %22, %24 : vector<128x128xf32>
      %cst_21 = arith.constant 0.000000e+00 : f32
      %26 = vector.broadcast %cst_21 : f32 to vector<128x128xf32>
      %27 = arith.maximumf %25, %26 : vector<128x128xf32>
      %c128_i32 = arith.constant 128 : i32
      %28 = arith.muli %arg0, %c128_i32 : i32
      %29 = tpu.iota {dimensions = array<i32: 0>} : vector<128x128xi32>
      %30 = vector.broadcast %28 : i32 to vector<128x128xi32>
      %31 = arith.addi %30, %29 : vector<128x128xi32>
      %c16_i32 = arith.constant 16 : i32
      %32 = vector.broadcast %c16_i32 : i32 to vector<128x128xi32>
      %33 = arith.cmpi slt, %31, %32 : vector<128x128xi32>
      %cst_22 = arith.constant 0.000000e+00 : f32
      %34 = vector.broadcast %cst_22 : f32 to vector<128x128xf32>
      %35 = arith.select %33, %27, %34 : vector<128x128xi1>, vector<128x128xf32>
      %36 = arith.truncf %35 : vector<128x128xf32> to vector<128x128xbf16>
      %c0_23 = arith.constant 0 : index
      %c0_24 = arith.constant 0 : index
      %37 = vector.load %arg9[%c0_23, %c0_24] : memref<128x128xbf16, #tpu.memory_space<vmem>>, vector<128x128xbf16>
      tpu.vector_store %arg9[%c0_23, %c0_24], %36 {strides = array<i32>} : memref<128x128xbf16, #tpu.memory_space<vmem>>, vector<128x128xbf16>,
      %cst_25 = arith.constant dense<0.000000e+00> : vector<128xf32>
      %38 = vector.multi_reduction <add>, %35, %cst_25 [0] : vector<128x128xf32> to vector<128xf32>
      %39 = vector.shape_cast %38 : vector<128xf32> to vector<1x128xf32>
      %40 = vector.shape_cast %39 : vector<1x128xf32> to vector<1x1x128xf32>
      %c0_26 = arith.constant 0 : index
      %c0_27 = arith.constant 0 : index
      %c0_28 = arith.constant 0 : index
      %41 = vector.load %arg10[%c0_26, %c0_27, %c0_28] : memref<1x1x128xf32, #tpu.memory_space<vmem>>, vector<1x1x128xf32>
      tpu.vector_store %arg10[%c0_26, %c0_27, %c0_28], %40 {strides = array<i32>} : memref<1x1x128xf32, #tpu.memory_space<vmem>>, vector<1x1x128xf32>,
      %42 = arith.mulf %35, %35 : vector<128x128xf32>
      %cst_29 = arith.constant dense<0.000000e+00> : vector<128xf32>
      %43 = vector.multi_reduction <add>, %42, %cst_29 [0] : vector<128x128xf32> to vector<128xf32>
      %44 = vector.shape_cast %43 : vector<128xf32> to vector<1x128xf32>
      %45 = vector.shape_cast %44 : vector<1x128xf32> to vector<1x1x128xf32>
      %c0_30 = arith.constant 0 : index
      %c0_31 = arith.constant 0 : index
      %c0_32 = arith.constant 0 : index
      %46 = vector.load %arg11[%c0_30, %c0_31, %c0_32] : memref<1x1x128xf32, #tpu.memory_space<vmem>>, vector<1x1x128xf32>
      tpu.vector_store %arg11[%c0_30, %c0_31, %c0_32], %45 {strides = array<i32>} : memref<1x1x128xf32, #tpu.memory_space<vmem>>, vector<1x1x128xf32>,
      %c0_33 = arith.constant 0 : index
      %c0_34 = arith.constant 0 : index
      %47 = vector.load %arg8[%c0_33, %c0_34] : memref<2x128xf32, #tpu.memory_space<vmem>>, vector<2x128xf32>
      %cst_35 = arith.constant dense<0.000000e+00> : vector<2x128xf32>
      %48 = tpu.matmul %47, %35, %cst_35 {dimension_numbers = #tpu.dot_dimension_numbers<[1], [0], [0], [1], [0, 0, 1, 1], [], []>} : vector<2x128xf32>, vector<128x128xf32>, vector<2x128xf32> -> vector<2x128xf32>
      %49 = vector.shape_cast %48 : vector<2x128xf32> to vector<1x2x128xf32>
      %c0_36 = arith.constant 0 : index
      %c0_37 = arith.constant 0 : index
      %c0_38 = arith.constant 0 : index
      %50 = vector.load %arg12[%c0_36, %c0_37, %c0_38] : memref<1x2x128xf32, #tpu.memory_space<vmem>>, vector<1x2x128xf32>
      tpu.vector_store %arg12[%c0_36, %c0_37, %c0_38], %49 {strides = array<i32>} : memref<1x2x128xf32, #tpu.memory_space<vmem>>, vector<1x2x128xf32>,
    } else {
    }
    return
  }
  func.func @transform_0(%arg0: i32, %arg1: i32) -> (i32, i32) {
    %c0_i32 = arith.constant 0 : i32
    return %arg0, %arg1 : i32, i32
  }
  func.func @transform_1(%arg0: i32, %arg1: i32) -> (i32, i32) {
    %c0_i32 = arith.constant 0 : i32
    %c0_i32_0 = arith.constant 0 : i32
    return %arg1, %c0_i32 : i32, i32
  }
  func.func @transform_2(%arg0: i32, %arg1: i32) -> (i32, i32) {
    %c0_i32 = arith.constant 0 : i32
    %c0_i32_0 = arith.constant 0 : i32
    %c0_i32_1 = arith.constant 0 : i32
    return %c0_i32, %c0_i32_0 : i32, i32
  }
  func.func @transform_3(%arg0: i32, %arg1: i32) -> (i32, i32) {
    %c0_i32 = arith.constant 0 : i32
    %c0_i32_0 = arith.constant 0 : i32
    %c0_i32_1 = arith.constant 0 : i32
    return %c0_i32, %c0_i32_0 : i32, i32
  }
  func.func @transform_4(%arg0: i32, %arg1: i32) -> (i32, i32) {
    %c0_i32 = arith.constant 0 : i32
    %c0_i32_0 = arith.constant 0 : i32
    return %arg0, %c0_i32 : i32, i32
  }
  func.func @transform_5(%arg0: i32, %arg1: i32) -> (i32, i32) {
    %c0_i32 = arith.constant 0 : i32
    %c0_i32_0 = arith.constant 0 : i32
    %c0_i32_1 = arith.constant 0 : i32
    return %c0_i32, %c0_i32_0 : i32, i32
  }
  func.func @transform_6(%arg0: i32, %arg1: i32) -> (i32, i32) {
    %c0_i32 = arith.constant 0 : i32
    %c0_i32_0 = arith.constant 0 : i32
    return %c0_i32, %arg0 : i32, i32
  }
  func.func @transform_7(%arg0: i32, %arg1: i32) -> (i32, i32) {
    %c0_i32 = arith.constant 0 : i32
    %c0_i32_0 = arith.constant 0 : i32
    return %arg0, %c0_i32 : i32, i32
  }
  func.func @transform_8(%arg0: i32, %arg1: i32) -> (i32, i32, i32) {
    %c0_i32 = arith.constant 0 : i32
    %c0_i32_0 = arith.constant 0 : i32
    %c0_i32_1 = arith.constant 0 : i32
    return %arg0, %c0_i32, %c0_i32_0 : i32, i32, i32
  }
  func.func @transform_9(%arg0: i32, %arg1: i32) -> (i32, i32, i32) {
    %c0_i32 = arith.constant 0 : i32
    %c0_i32_0 = arith.constant 0 : i32
    %c0_i32_1 = arith.constant 0 : i32
    return %arg0, %c0_i32, %c0_i32_0 : i32, i32, i32
  }
  func.func @transform_10(%arg0: i32, %arg1: i32) -> (i32, i32, i32) {
    %c0_i32 = arith.constant 0 : i32
    %c0_i32_0 = arith.constant 0 : i32
    %c0_i32_1 = arith.constant 0 : i32
    return %arg0, %c0_i32, %c0_i32_0 : i32, i32, i32
  }
}

module attributes {stable_mosaic.version = 11 : i64} {
  func.func @_head_kernel(%arg0: memref<2x128xf32, #tpu.memory_space<vmem>>, %arg1: memref<1x128xf32, #tpu.memory_space<vmem>>, %arg2: memref<1x128xf32, #tpu.memory_space<vmem>>, %arg3: memref<128x128xf32, #tpu.memory_space<vmem>>, %arg4: memref<1x128xf32, #tpu.memory_space<vmem>>, %arg5: memref<1x128xf32, #tpu.memory_space<vmem>>, %arg6: memref<1x128xf32, #tpu.memory_space<vmem>>, %arg7: memref<128x128xf32, #tpu.memory_space<vmem>>, %arg8: memref<1x128xf32, #tpu.memory_space<vmem>>, %arg9: memref<2x128xf32, #tpu.memory_space<vmem>>) attributes {dimension_semantics = [], scalar_prefetch = 0 : i64, scratch_operands = 0 : i64, tpu.core_type = #tpu.core_type<tc>} {
    %c0 = arith.constant 0 : index
    %c0_0 = arith.constant 0 : index
    %0 = vector.load %arg0[%c0, %c0_0] : memref<2x128xf32, #tpu.memory_space<vmem>>, vector<2x128xf32>
    %cst = arith.constant dense<0.000000e+00> : vector<128xf32>
    %1 = vector.multi_reduction <add>, %0, %cst [0] : vector<2x128xf32> to vector<128xf32>
    %2 = vector.shape_cast %1 : vector<128xf32> to vector<1x128xf32>
    %cst_1 = arith.constant 2.000000e+00 : f32
    %3 = vector.broadcast %cst_1 : f32 to vector<1x128xf32>
    %4 = arith.divf %2, %3 : vector<1x128xf32>
    %5 = arith.mulf %0, %0 : vector<2x128xf32>
    %cst_2 = arith.constant dense<0.000000e+00> : vector<128xf32>
    %6 = vector.multi_reduction <add>, %5, %cst_2 [0] : vector<2x128xf32> to vector<128xf32>
    %7 = vector.shape_cast %6 : vector<128xf32> to vector<1x128xf32>
    %cst_3 = arith.constant 2.000000e+00 : f32
    %8 = vector.broadcast %cst_3 : f32 to vector<1x128xf32>
    %9 = arith.divf %7, %8 : vector<1x128xf32>
    %10 = arith.mulf %4, %4 : vector<1x128xf32>
    %11 = arith.subf %9, %10 : vector<1x128xf32>
    %cst_4 = arith.constant 0.000000e+00 : f32
    %12 = vector.broadcast %cst_4 : f32 to vector<1x128xf32>
    %13 = arith.maximumf %11, %12 : vector<1x128xf32>
    %14 = vector.broadcast %4 : vector<1x128xf32> to vector<2x128xf32>
    %15 = arith.subf %0, %14 : vector<2x128xf32>
    %cst_5 = arith.constant 9.99999974E-6 : f32
    %16 = vector.broadcast %cst_5 : f32 to vector<1x128xf32>
    %17 = arith.addf %13, %16 : vector<1x128xf32>
    %18 = math.rsqrt %17 : vector<1x128xf32>
    %19 = vector.broadcast %18 : vector<1x128xf32> to vector<2x128xf32>
    %20 = arith.mulf %15, %19 : vector<2x128xf32>
    %c0_6 = arith.constant 0 : index
    %c0_7 = arith.constant 0 : index
    %21 = vector.load %arg1[%c0_6, %c0_7] : memref<1x128xf32, #tpu.memory_space<vmem>>, vector<1x128xf32>
    %22 = vector.broadcast %21 : vector<1x128xf32> to vector<2x128xf32>
    %23 = arith.mulf %20, %22 : vector<2x128xf32>
    %c0_8 = arith.constant 0 : index
    %c0_9 = arith.constant 0 : index
    %24 = vector.load %arg2[%c0_8, %c0_9] : memref<1x128xf32, #tpu.memory_space<vmem>>, vector<1x128xf32>
    %25 = vector.broadcast %24 : vector<1x128xf32> to vector<2x128xf32>
    %26 = arith.addf %23, %25 : vector<2x128xf32>
    %c0_10 = arith.constant 0 : index
    %c0_11 = arith.constant 0 : index
    %27 = vector.load %arg3[%c0_10, %c0_11] : memref<128x128xf32, #tpu.memory_space<vmem>>, vector<128x128xf32>
    %cst_12 = arith.constant dense<0.000000e+00> : vector<2x128xf32>
    %28 = tpu.matmul %26, %27, %cst_12 {dimension_numbers = #tpu.dot_dimension_numbers<[1], [0], [0], [1], [0, 0, 1, 1], [], []>} : vector<2x128xf32>, vector<128x128xf32>, vector<2x128xf32> -> vector<2x128xf32>
    %c0_13 = arith.constant 0 : index
    %c0_14 = arith.constant 0 : index
    %29 = vector.load %arg4[%c0_13, %c0_14] : memref<1x128xf32, #tpu.memory_space<vmem>>, vector<1x128xf32>
    %30 = vector.broadcast %29 : vector<1x128xf32> to vector<2x128xf32>
    %31 = arith.addf %28, %30 : vector<2x128xf32>
    %cst_15 = arith.constant 0.000000e+00 : f32
    %32 = vector.broadcast %cst_15 : f32 to vector<2x128xf32>
    %33 = arith.maximumf %31, %32 : vector<2x128xf32>
    %cst_16 = arith.constant dense<0.000000e+00> : vector<128xf32>
    %34 = vector.multi_reduction <add>, %33, %cst_16 [0] : vector<2x128xf32> to vector<128xf32>
    %35 = vector.shape_cast %34 : vector<128xf32> to vector<1x128xf32>
    %cst_17 = arith.constant 2.000000e+00 : f32
    %36 = vector.broadcast %cst_17 : f32 to vector<1x128xf32>
    %37 = arith.divf %35, %36 : vector<1x128xf32>
    %38 = arith.mulf %33, %33 : vector<2x128xf32>
    %cst_18 = arith.constant dense<0.000000e+00> : vector<128xf32>
    %39 = vector.multi_reduction <add>, %38, %cst_18 [0] : vector<2x128xf32> to vector<128xf32>
    %40 = vector.shape_cast %39 : vector<128xf32> to vector<1x128xf32>
    %cst_19 = arith.constant 2.000000e+00 : f32
    %41 = vector.broadcast %cst_19 : f32 to vector<1x128xf32>
    %42 = arith.divf %40, %41 : vector<1x128xf32>
    %43 = arith.mulf %37, %37 : vector<1x128xf32>
    %44 = arith.subf %42, %43 : vector<1x128xf32>
    %cst_20 = arith.constant 0.000000e+00 : f32
    %45 = vector.broadcast %cst_20 : f32 to vector<1x128xf32>
    %46 = arith.maximumf %44, %45 : vector<1x128xf32>
    %47 = vector.broadcast %37 : vector<1x128xf32> to vector<2x128xf32>
    %48 = arith.subf %33, %47 : vector<2x128xf32>
    %cst_21 = arith.constant 9.99999974E-6 : f32
    %49 = vector.broadcast %cst_21 : f32 to vector<1x128xf32>
    %50 = arith.addf %46, %49 : vector<1x128xf32>
    %51 = math.rsqrt %50 : vector<1x128xf32>
    %52 = vector.broadcast %51 : vector<1x128xf32> to vector<2x128xf32>
    %53 = arith.mulf %48, %52 : vector<2x128xf32>
    %c0_22 = arith.constant 0 : index
    %c0_23 = arith.constant 0 : index
    %54 = vector.load %arg5[%c0_22, %c0_23] : memref<1x128xf32, #tpu.memory_space<vmem>>, vector<1x128xf32>
    %55 = vector.broadcast %54 : vector<1x128xf32> to vector<2x128xf32>
    %56 = arith.mulf %53, %55 : vector<2x128xf32>
    %c0_24 = arith.constant 0 : index
    %c0_25 = arith.constant 0 : index
    %57 = vector.load %arg6[%c0_24, %c0_25] : memref<1x128xf32, #tpu.memory_space<vmem>>, vector<1x128xf32>
    %58 = vector.broadcast %57 : vector<1x128xf32> to vector<2x128xf32>
    %59 = arith.addf %56, %58 : vector<2x128xf32>
    %c0_26 = arith.constant 0 : index
    %c0_27 = arith.constant 0 : index
    %60 = vector.load %arg7[%c0_26, %c0_27] : memref<128x128xf32, #tpu.memory_space<vmem>>, vector<128x128xf32>
    %cst_28 = arith.constant dense<0.000000e+00> : vector<2x128xf32>
    %61 = tpu.matmul %59, %60, %cst_28 {dimension_numbers = #tpu.dot_dimension_numbers<[1], [0], [0], [1], [0, 0, 1, 1], [], []>} : vector<2x128xf32>, vector<128x128xf32>, vector<2x128xf32> -> vector<2x128xf32>
    %c0_29 = arith.constant 0 : index
    %c0_30 = arith.constant 0 : index
    %62 = vector.load %arg8[%c0_29, %c0_30] : memref<1x128xf32, #tpu.memory_space<vmem>>, vector<1x128xf32>
    %63 = vector.broadcast %62 : vector<1x128xf32> to vector<2x128xf32>
    %64 = arith.addf %61, %63 : vector<2x128xf32>
    %65 = tpu.iota {dimensions = array<i32: 1>} : vector<2x128xi32>
    %c4_i32 = arith.constant 4 : i32
    %66 = vector.broadcast %c4_i32 : i32 to vector<2x128xi32>
    %67 = arith.cmpi slt, %65, %66 : vector<2x128xi32>
    %cst_31 = arith.constant -1.000000e+30 : f32
    %68 = vector.broadcast %cst_31 : f32 to vector<2x128xf32>
    %69 = arith.select %67, %64, %68 : vector<2x128xi1>, vector<2x128xf32>
    %cst_32 = arith.constant dense<0xFF800000> : vector<2xf32>
    %70 = vector.multi_reduction <maximumf>, %69, %cst_32 [1] : vector<2x128xf32> to vector<2xf32>
    %71 = vector.shape_cast %70 : vector<2xf32> to vector<2x1xf32>
    %72 = vector.broadcast %71 : vector<2x1xf32> to vector<2x128xf32>
    %73 = arith.subf %69, %72 : vector<2x128xf32>
    %74 = math.exp %73 : vector<2x128xf32>
    %cst_33 = arith.constant dense<0.000000e+00> : vector<2xf32>
    %75 = vector.multi_reduction <add>, %74, %cst_33 [1] : vector<2x128xf32> to vector<2xf32>
    %76 = vector.shape_cast %75 : vector<2xf32> to vector<2x1xf32>
    %77 = math.log %76 : vector<2x1xf32>
    %78 = vector.broadcast %77 : vector<2x1xf32> to vector<2x128xf32>
    %79 = arith.subf %73, %78 : vector<2x128xf32>
    %c0_34 = arith.constant 0 : index
    %c0_35 = arith.constant 0 : index
    %80 = vector.load %arg9[%c0_34, %c0_35] : memref<2x128xf32, #tpu.memory_space<vmem>>, vector<2x128xf32>
    tpu.vector_store %arg9[%c0_34, %c0_35], %79 {strides = array<i32>} : memref<2x128xf32, #tpu.memory_space<vmem>>, vector<2x128xf32>,
    return
  }
}

</mosaic_0001>

<bundles_post_ra>
// kernel: res_gcn_adj_forward.9
= control target key start
LH: loop header
LB: loop body
LE: loop exit
PB: predicated region body
PF: predicated region fallthrough
CT: control target
= control target key end

     0   :  { %v477_v1 = vmov 0.0   ;;  %vm478_vm0 = vmmov 0   ;;  %vm34_vm1 = vcmask 1041408   ;;  %s696_s0 = inlined_call_operand.vmem [shape: f32[2,128], index: 0, kind: input, shape index: {}]   ;;  %s697_s1 = inlined_call_operand.vmem [shape: f32[1,128], index: 1, kind: input, shape index: {}]   ;;  %s698_s2 = inlined_call_operand.vmem [shape: f32[1,128], index: 2, kind: input, shape index: {}]   ;;  %s699_s3 = inlined_call_operand.vmem [shape: f32[128,128], index: 3, kind: input, shape index: {}]   ;;  %s700_s4 = inlined_call_operand.vmem [shape: f32[1,128], index: 4, kind: input, shape index: {}]   ;;  %s701_s5 = inlined_call_operand.vmem [shape: f32[1,128], index: 5, kind: input, shape index: {}]   ;;  %s702_s6 = inlined_call_operand.vmem [shape: f32[1,128], index: 6, kind: input, shape index: {}]   ;;  %s703_s7 = inlined_call_operand.vmem [shape: f32[128,128], index: 7, kind: input, shape index: {}]   ;;  %s704_s8 = inlined_call_operand.vmem [shape: f32[1,128], index: 8, kind: input, shape index: {}]   ;;  %s705_s9 = inlined_call_operand.hbm [shape: f32[2,128], index: 9, kind: output, shape index: {}]  }
   0x1   :  { %v91_v0 = vld [vmem:[%s699_s3 + $0x78] sm:$0xff]  ;;  %374 = vmatprep.subr.mxu0 %v477_v1  ;;  %v90_v2 = vld [vmem:[%s699_s3 + $0x70] sm:$0xff]  ;;  %406 = vmatprep.mubr.msk.f32.mxu0 %vm478_vm0, %v477_v1  ;;  %v89_v3 = vld [vmem:[%s699_s3 + $0x68] sm:$0xff] }
   0x2   :  { %375 = vmatpush3.msra.mxu0 %v91_v0  ;;  %409 = vmatprep.subr.mxu1 %v477_v1  ;;  %v88_v4 = vld [vmem:[%s699_s3 + $0x60] sm:$0xff]  ;;  %v87_v8 = vld [vmem:[%s699_s3 + $0x58] sm:$0xff] }
   0x3   :  { %376 = vmatprep.subr.mxu0 %v477_v1  ;;  %441 = vmatprep.mubr.msk.f32.mxu1 %vm478_vm0, %v477_v1  ;;  %v551_v5 = vld [vmem:[%s696_s0] sm:$0x3] }
   0x4   :  { %377 = vmatpush3.msra.mxu0 %v90_v2  ;;  %v35_v6 = vsel %vm34_vm1, %v551_v5, 0.0  ;;  %v44_v7 = vmul.f32 %v551_v5, %v551_v5 }
   0x5   :  { %378 = vmatprep.subr.mxu0 %v477_v1  ;;  %v36_v9 = vrot.slane %v35_v6, 4 }
   0x6   :  { %379 = vmatpush3.msra.mxu0 %v89_v3 }
   0x7   :  { %380 = vmatprep.subr.mxu0 %v477_v1 }
   0x8   :  { %14 = vsyncpa [#allocation3], 0  ;;  %381 = vmatpush3.msra.mxu0 %v88_v4  ;;  %v45_v10 = vsel %vm34_vm1, %v44_v7, 0.0  ;;  %v86_v11 = vld [vmem:[%s699_s3 + $0x50] sm:$0xff]  ;;  %v37_v12 = vadd.f32 %v36_v9, %v35_v6  ;;  %v85_v14 = vld [vmem:[%s699_s3 + $0x48] sm:$0xff] }
   0x9   :  { %382 = vmatprep.subr.mxu0 %v477_v1  ;;  %v46_v13 = vrot.slane %v45_v10, 4  ;;  %v84_v17 = vld [vmem:[%s699_s3 + $0x40] sm:$0xff]  ;;  %v83_v20 = vld [vmem:[%s699_s3 + $0x38] sm:$0xff]  ;;  %v82_v23 = vld [vmem:[%s699_s3 + $0x30] sm:$0xff] }
   0xa   :  { %383 = vmatpush3.msra.mxu0 %v87_v8  ;;  %v38_v15 = vrot.slane %v37_v12, 2  ;;  %v81_v26 = vld [vmem:[%s699_s3 + $0x28] sm:$0xff]  ;;  %v80_v29 = vld [vmem:[%s699_s3 + $0x20] sm:$0xff]  ;;  %v79_v32 = vld [vmem:[%s699_s3 + $0x18] sm:$0xff] }
   0xb   :  { %384 = vmatprep.subr.mxu0 %v477_v1  ;;  %v47_v16 = vadd.f32 %v46_v13, %v45_v10  ;;  %v78_v34 = vld [vmem:[%s699_s3 + $0x10] sm:$0xff]  ;;  %v77_v36 = vld [vmem:[%s699_s3 + $0x8] sm:$0xff]  ;;  %v76_v38 = vld [vmem:[%s699_s3] sm:$0xff] }
   0xc   :  { %385 = vmatpush3.msra.mxu0 %v86_v11  ;;  %v39_v18 = vadd.f32 %v38_v15, %v37_v12  ;;  %v334_v41 = vld [vmem:[%s697_s1] ss:$0 sm:$0xff]  ;;  %v225_v46 = vld [vmem:[%s703_s7 + $0x78] sm:$0xff]  ;;  %v224_v47 = vld [vmem:[%s703_s7 + $0x70] sm:$0xff] }
   0xd   :  { %386 = vmatprep.subr.mxu0 %v477_v1  ;;  %v48_v19 = vrot.slane %v47_v16, 2  ;;  %v335_v43 = vld [vmem:[%s698_s2] ss:$0 sm:$0xff]  ;;  %410 = vmatpush3.msra.mxu1 %v225_v46  ;;  %v223_v48 = vld [vmem:[%s703_s7 + $0x68] sm:$0xff]  ;;  %v221_v50 = vld [vmem:[%s703_s7 + $0x58] sm:$0xff] }
   0xe   :  { %387 = vmatpush3.msra.mxu0 %v85_v14  ;;  %v40_v21 = vrot.slane %v39_v18, 1  ;;  %411 = vmatprep.subr.mxu1 %v477_v1  ;;  %v222_v49 = vld [vmem:[%s703_s7 + $0x60] sm:$0xff]  ;;  %v220_v51 = vld [vmem:[%s703_s7 + $0x50] sm:$0xff]  ;;  %v219_v52 = vld [vmem:[%s703_s7 + $0x48] sm:$0xff] }
   0xf   :  { %388 = vmatprep.subr.mxu0 %v477_v1  ;;  %v49_v22 = vadd.f32 %v48_v19, %v47_v16  ;;  %412 = vmatpush3.msra.mxu1 %v224_v47  ;;  %v218_v53 = vld [vmem:[%s703_s7 + $0x40] sm:$0xff]  ;;  %v217_v54 = vld [vmem:[%s703_s7 + $0x38] sm:$0xff]  ;;  %v216_v55 = vld [vmem:[%s703_s7 + $0x30] sm:$0xff] }
  0x10   :  { %389 = vmatpush3.msra.mxu0 %v84_v17  ;;  %v41_v24 = vadd.f32 %v40_v21, %v39_v18  ;;  %413 = vmatprep.subr.mxu1 %v477_v1  ;;  %v215_v56 = vld [vmem:[%s703_s7 + $0x28] sm:$0xff]  ;;  %v214_v57 = vld [vmem:[%s703_s7 + $0x20] sm:$0xff]  ;;  %v213_v58 = vld [vmem:[%s703_s7 + $0x18] sm:$0xff] }
  0x11   :  { %390 = vmatprep.subr.mxu0 %v477_v1  ;;  %v50_v25 = vrot.slane %v49_v22, 1  ;;  %414 = vmatpush3.msra.mxu1 %v223_v48  ;;  %v212_v59 = vld [vmem:[%s703_s7 + $0x10] sm:$0xff]  ;;  %v211_v60 = vld [vmem:[%s703_s7 + $0x8] sm:$0xff]  ;;  %v210_v61 = vld [vmem:[%s703_s7] sm:$0xff] }
  0x12   :  { %391 = vmatpush3.msra.mxu0 %v83_v20  ;;  %v43_v27 = vmul.f32 0.5, %v41_v24  ;;  %415 = vmatprep.subr.mxu1 %v477_v1  ;;  %v336_v62 = vld [vmem:[%s700_s4] ss:$0 sm:$0xff] }
  0x13   :  { %392 = vmatprep.subr.mxu0 %v477_v1  ;;  %v51_v28 = vadd.f32 %v50_v25, %v49_v22  ;;  %416 = vmatpush3.msra.mxu1 %v222_v49 }
  0x14   :  { %393 = vmatpush3.msra.mxu0 %v82_v23  ;;  %v53_v31 = vmul.f32 %v43_v27, %v43_v27  ;;  %v56_v39 = vsub.f32 %v551_v5, %v43_v27  ;;  %417 = vmatprep.subr.mxu1 %v477_v1 }
  0x15   :  { %394 = vmatprep.subr.mxu0 %v477_v1  ;;  %v52_v30 = vmul.f32 0.5, %v51_v28  ;;  %418 = vmatpush3.msra.mxu1 %v221_v50  ;;  %v338_v28 = vld [vmem:[%s702_s6] ss:$0 sm:$0xff] }
  0x16   :  { %395 = vmatpush3.msra.mxu0 %v81_v26  ;;  %419 = vmatprep.subr.mxu1 %v477_v1  ;;  %v337_v26 = vld [vmem:[%s701_s5] ss:$0 sm:$0xff]  ;;  %s479_s5 = smov [#allocation2]  }
  0x17   :  { %396 = vmatprep.subr.mxu0 %v477_v1  ;;  %v54_v33 = vsub.f32 %v52_v30, %v53_v31  ;;  %420 = vmatpush3.msra.mxu1 %v220_v51  ;;  %v303_v31 = vlaneseq  ;;  %s326_s6 = sshll.u32 %s479_s5, 4  ;;  %s327_s6 = int_to_ptr.vmem [resolvable:$true] %s326_s6 }
  0x18   :  { %397 = vmatpush3.msra.mxu0 %v80_v29  ;;  %421 = vmatprep.subr.mxu1 %v477_v1  ;;  %p460_p1 = scmp.lt.s32.totalorder %s327_s6, %s327_s6 }
  0x19   :  { %398 = vmatprep.subr.mxu0 %v477_v1  ;;  %v55_v35 = vmax.f32 %v54_v33, 0.0  ;;  %422 = vmatpush3.msra.mxu1 %v219_v52  ;;  %v339_v33 = vld [vmem:[%s704_s8] ss:$0 sm:$0xff]  ;;  %s455_s8 = scalar_lea.vmem %s327_s6, 32 }
  0x1a   :  { %399 = vmatpush3.msra.mxu0 %v79_v32  ;;  %423 = vmatprep.subr.mxu1 %v477_v1  ;;  %v304_v32 = vand.u32 127, %v303_v31  ;;  %p456_p0 = scmp.ne.s32.totalorder %s327_s6, %s455_s8  ;;  %p461_p2 = scmp.lt.s32.totalorder %s455_s8, %s455_s8 }
  0x1b   :  { %400 = vmatprep.subr.mxu0 %v477_v1  ;;  %v57_v37 = vadd.f32 1e-05, %v55_v35  ;;  %424 = vmatpush3.msra.mxu1 %v218_v53 }
  0x1c   :  { %401 = vmatpush3.msra.mxu0 %v78_v34  ;;  %425 = vmatprep.subr.mxu1 %v477_v1  ;;  %vm305_vm2 = vcmp.lt.s32.totalorder %v304_v32, 4  ;;  %p462_p3 = por %p461_p2, %p460_p1 }
  0x1d   :  { %402 = vmatprep.subr.mxu0 %v477_v1  ;;  %447 = vrsqrt.f32 %v57_v37  ;;  %426 = vmatpush3.msra.mxu1 %v217_v54 }
  0x1e   :  { %403 = vmatpush3.msra.mxu0 %v77_v36  ;;  %427 = vmatprep.subr.mxu1 %v477_v1  ;;  %p463_p4 = pnand %p462_p3, %p456_p0 }
  0x1f   :  { %404 = vmatprep.subr.mxu0 %v477_v1  ;;  %428 = vmatpush3.msra.mxu1 %v216_v55 }
  0x20   :  { %405 = vmatpush3.msra.mxu0 %v76_v38  ;;  %429 = vmatprep.subr.mxu1 %v477_v1 }
  0x21   :  { %430 = vmatpush3.msra.mxu1 %v215_v56 }
  0x22   :  { %431 = vmatprep.subr.mxu1 %v477_v1 }
  0x23   :  { %432 = vmatpush3.msra.mxu1 %v214_v57 }
  0x24   :  { %433 = vmatprep.subr.mxu1 %v477_v1 }
  0x25   :  { %434 = vmatpush3.msra.mxu1 %v213_v58 }
  0x26   :  { %435 = vmatprep.subr.mxu1 %v477_v1 }
  0x27   :  { %436 = vmatpush3.msra.mxu1 %v212_v59 }
  0x28   :  { %437 = vmatprep.subr.mxu1 %v477_v1 }
  0x29   :  { %438 = vmatpush3.msra.mxu1 %v211_v60 }
  0x2a   :  { %v448_v40 = vpop.eup %447  ;;  %439 = vmatprep.subr.mxu1 %v477_v1 }
  0x2b   :  { %v59_v42 = vmul.f32 %v448_v40, %v56_v39  ;;  %440 = vmatpush3.msra.mxu1 %v210_v61 }
  0x2d   :  { %v67_v44 = vmul.f32 %v334_v41, %v59_v42 }
  0x2f   :  { %v75_v45 = vadd.f32 %v335_v43, %v67_v44 }
  0x31   :  { %407 = vmatmul.mubr.f32.vlgmr.msra.gmra.mxu0 %v75_v45 }
  0xf1   :  { %v165_v63 = vpop.f32.mrf.mxu0 }
  0xf2   :  { %v166_v0 = vadd.f32 %v336_v62, %v165_v63 }
  0xf3   :  { %v408_v2 = vpop.f32.mrf.mxu0 }
  0xf4   :  { %v169_v3 = vmax.f32 %v166_v0, 0.0 }
  0xf6   :  { %v170_v4 = vsel %vm34_vm1, %v169_v3, 0.0  ;;  %v178_v5 = vmul.f32 %v169_v3, %v169_v3 }
  0xf7   :  { %v171_v6 = vrot.slane %v170_v4, 4 }
  0xf8   :  { %v179_v7 = vsel %vm34_vm1, %v178_v5, 0.0 }
  0xf9   :  { %v172_v8 = vadd.f32 %v171_v6, %v170_v4  ;;  %v180_v9 = vrot.slane %v179_v7, 4 }
  0xfb   :  { %v173_v10 = vrot.slane %v172_v8, 2  ;;  %v181_v11 = vadd.f32 %v180_v9, %v179_v7 }
  0xfd   :  { %v174_v1 = vadd.f32 %v173_v10, %v172_v8  ;;  %v182_v12 = vrot.slane %v181_v11, 2 }
  0xff   :  { %v175_v13 = vrot.slane %v174_v1, 1  ;;  %v183_v14 = vadd.f32 %v182_v12, %v181_v11 }
 0x101   :  { %v176_v15 = vadd.f32 %v175_v13, %v174_v1  ;;  %v184_v16 = vrot.slane %v183_v14, 1 }
 0x103   :  { %v177_v17 = vmul.f32 0.5, %v176_v15  ;;  %v185_v18 = vadd.f32 %v184_v16, %v183_v14 }
 0x105   :  { %v186_v19 = vmul.f32 0.5, %v185_v18  ;;  %v187_v20 = vmul.f32 %v177_v17, %v177_v17  ;;  %v190_v24 = vsub.f32 %v169_v3, %v177_v17 }
 0x107   :  { %v188_v21 = vsub.f32 %v186_v19, %v187_v20 }
 0x109   :  { %v189_v22 = vmax.f32 %v188_v21, 0.0 }
 0x10b   :  { %v191_v23 = vadd.f32 1e-05, %v189_v22 }
 0x10d   :  { %449 = vrsqrt.f32 %v191_v23 }
 0x11a   :  { %v450_v25 = vpop.eup %449 }
 0x11b   :  { %v193_v27 = vmul.f32 %v450_v25, %v190_v24 }
 0x11d   :  { %v201_v29 = vmul.f32 %v337_v26, %v193_v27 }
 0x11f   :  { %v209_v30 = vadd.f32 %v338_v28, %v201_v29 }
 0x121   :  { %442 = vmatmul.mubr.f32.vlgmr.msra.gmra.mxu1 %v209_v30 }
 0x1e1   :  { %v299_v34 = vpop.f32.mrf.mxu1 }
 0x1e2   :  { %v300_v35 = vadd.f32 %v339_v33, %v299_v34 }
 0x1e3   :  { %v443_v36 = vpop.f32.mrf.mxu1 }
 0x1e4   :  { %v306_v37 = vsel %vm305_vm2, %v300_v35, -1e+30 }
 0x1e5   :  { %v307_v38 = vsel %vm34_vm1, %v306_v37, -inf }
 0x1e6   :  { %308 = vmax.xlane.f32.xlu0 %v307_v38 }
 0x26f   :  { %v309_v39 = vpop.xlane.xlu0 %308 }
 0x270   :  { %v310_v40 = vsub.f32 %v306_v37, %v309_v39 }
 0x272   :  { %v311_v41 = vmul.f32 1.442695, %v310_v40 }
 0x274   :  { %451 = vpow2.f32 %v311_v41 }
 0x281   :  { %v452_v42 = vpop.eup %451 }
 0x282   :  { %v313_v43 = vsel %vm34_vm1, %v452_v42, 0.0 }
 0x283   :  { %314 = vadd.xlane.f32.xlu0 %v313_v43 }
 0x30c   :  { %v315_v44 = vpop.xlane.xlu0 %314 }
 0x30d   :  { %453 = vlog2.f32 %v315_v44 }
 0x31a   :  { %v454_v45 = vpop.eup %453 }
 0x31b   :  { %v317_v46 = vmul.f32 0.6931472, %v454_v45 }
 0x31d   :  { %v318_v47 = vsub.f32 %v310_v40, %v317_v46 }
 0x31f   :  { %319 = vst [vmem:[#allocation2] sm:$0x3] %v318_v47 }
 0x320   :  { %466 = shalt.err (!%p463_p4)
}
 0x321   :  { %329 = dma.vmem_to_hbm [thread:$0]  %s327_s6, 32, %s705_s9, [#allocation3]  }
 0x322   :  { %475 = dma.done.wait [#allocation3], 32  }
 0x323   :  { %476 = vsyncadd [#allocation3], 4294967264 }
 0x324   :  { %333 = vsyncpa [#allocation3], 1 }

// kernel: res_gcn_adj_forward.8
= control target key start
LH: loop header
LB: loop body
LE: loop exit
PB: predicated region body
PF: predicated region fallthrough
CT: control target
= control target key end

     0   :  { %16 = vsyncpa [#allocation4], 0  ;;  %s1334_s0 = inlined_call_operand.vmem [shape: s8[128,128], index: 0, kind: input, shape index: {}]   ;;  %s1335_s1 = inlined_call_operand.vmem [shape: bf16[128,128], index: 1, kind: input, shape index: {}]   ;;  %s1336_s2 = inlined_call_operand.vmem [shape: bf16[128,128], index: 2, kind: input, shape index: {}]   ;;  %s1337_s3 = inlined_call_operand.vmem [shape: f32[1,128], index: 3, kind: input, shape index: {}]   ;;  %s1338_s4 = inlined_call_operand.vmem [shape: f32[128,1], index: 4, kind: input, shape index: {}]   ;;  %s1339_s5 = inlined_call_operand.vmem [shape: f32[1,128], index: 5, kind: input, shape index: {}]   ;;  %s1340_s6 = inlined_call_operand.vmem [shape: f32[2,128], index: 6, kind: input, shape index: {}]   ;;  %s1341_s7 = inlined_call_operand.hbm [shape: bf16[128,128], index: 7, kind: output, shape index: {0}]   ;;  %s1342_s8 = inlined_call_operand.hbm [shape: f32[1,1,128], index: 8, kind: output, shape index: {1}]   ;;  %s1343_s9 = inlined_call_operand.hbm [shape: f32[1,1,128], index: 9, kind: output, shape index: {2}]   ;;  %s1344_s10 = inlined_call_operand.vmem [shape: f32[1,2,128], index: 10, kind: output, shape index: {3}]  }
   0x1   :  { %v1103_v0 = vld [vmem:[%s1335_s1 + $0x38] sm:$0xff]   ;;  %v1104_v1 = vld [vmem:[%s1335_s1 + $0x30] sm:$0xff]   ;;  %v1105_v2 = vld [vmem:[%s1335_s1 + $0x28] sm:$0xff]  }
   0x2   :  { %1022 = vmatprep.subr.bf16.mxu0 %v1103_v0  ;;  %v1106_v3 = vld [vmem:[%s1335_s1 + $0x20] sm:$0xff]   ;;  %v1111_v6 = vld [vmem:[%s1336_s2 + $0x38] sm:$0xff]   ;;  %v1112_v7 = vld [vmem:[%s1336_s2 + $0x30] sm:$0xff]  }
   0x3   :  { %1023 = vmatpush3.bf16.msra.mxu0 %v1103_v0  ;;  %v69_v4 = vld [vmem:[%s1334_s0] sm:$0xff]  ;;  %v1107_v8 = vld [vmem:[%s1335_s1 + $0x18] sm:$0xff]   ;;  %1054 = vmatprep.subr.bf16.mxu1 %v1111_v6  ;;  %v1113_v9 = vld [vmem:[%s1336_s2 + $0x28] sm:$0xff]  }
   0x4   :  { %1024 = vmatprep.subr.bf16.mxu0 %v1104_v1  ;;  %v73_v5 = vunpack.c.l.s8.bf16 %v69_v4  ;;  %1055 = vmatpush3.bf16.msra.mxu1 %v1111_v6 }
   0x5   :  { %1056 = vmatprep.subr.bf16.mxu1 %v1112_v7 }
   0x6   :  { %1038 = vmatprep.mubr.bf16.mxu0 %v73_v5 }
   0x7   :  { %1025 = vmatpush3.bf16.msra.mxu0 %v1104_v1 }
   0x8   :  { %1026 = vmatprep.subr.bf16.mxu0 %v1105_v2 }
   0xb   :  { %1027 = vmatpush3.bf16.msra.mxu0 %v1105_v2 }
   0xc   :  { %1028 = vmatprep.subr.bf16.mxu0 %v1106_v3 }
   0xf   :  { %1029 = vmatpush3.bf16.msra.mxu0 %v1106_v3 }
  0x10   :  { %17 = vsyncpa [#allocation6], 0  ;;  %1030 = vmatprep.subr.bf16.mxu0 %v1107_v8  ;;  %v1108_v10 = vld [vmem:[%s1335_s1 + $0x10] sm:$0xff]   ;;  %1057 = vmatpush3.bf16.msra.mxu1 %v1112_v7  ;;  %v1114_v11 = vld [vmem:[%s1336_s2 + $0x20] sm:$0xff]   ;;  %v74_v16 = vunpack.c.h.s8.bf16 %v69_v4  ;;  %v1183_v29 = vmov 0   ;;  %v1184_v55 = vmov 0.0  }
  0x11   :  { %1058 = vmatprep.subr.bf16.mxu1 %v1113_v9  ;;  %v1109_v12 = vld [vmem:[%s1335_s1 + $0x8] sm:$0xff]   ;;  %v1115_v13 = vld [vmem:[%s1336_s2 + $0x18] sm:$0xff]   ;;  %v1110_v14 = vld [vmem:[%s1335_s1] sm:$0xff]   ;;  %1102 = vset.pattern.permute.xlu0 %v1183_v29  ;;  %vm1185_vm0 = vmmov 0   ;;  %s1188_s18 = smov [#allocation3]  }
  0x12   :  { %v1116_v15 = vld [vmem:[%s1336_s2 + $0x10] sm:$0xff]   ;;  %v70_v17 = vld [vmem:[%s1334_s0 + $0x8] sm:$0xff]  ;;  %v72_v23 = vld [vmem:[%s1334_s0 + $0x18] sm:$0xff]  ;;  %s904_s19 = sshll.u32 %s1188_s18, 4  ;;  %s905_s19 = int_to_ptr.vmem [resolvable:$true] %s904_s19 }
  0x13   :  { %1031 = vmatpush3.bf16.msra.mxu0 %v1107_v8  ;;  %v75_v18 = vunpack.c.l.s8.bf16 %v70_v17  ;;  %v76_v19 = vunpack.c.h.s8.bf16 %v70_v17  ;;  %v71_v20 = vld [vmem:[%s1334_s0 + $0x10] sm:$0xff]  ;;  %v79_v24 = vunpack.c.l.s8.bf16 %v72_v23  ;;  %v80_v25 = vunpack.c.h.s8.bf16 %v72_v23  ;;  %v1117_v26 = vld [vmem:[%s1336_s2 + $0x8] sm:$0xff]   ;;  %v1118_v27 = vld [vmem:[%s1336_s2] sm:$0xff]  }
  0x14   :  { %1032 = vmatprep.subr.bf16.mxu0 %v1108_v10  ;;  %1059 = vmatpush3.bf16.msra.mxu1 %v1113_v9  ;;  %v77_v21 = vunpack.c.l.s8.bf16 %v71_v20  ;;  %v78_v22 = vunpack.c.h.s8.bf16 %v71_v20  ;;  %v318_v28 = vld [vmem:[%s1338_s4 + $0x8] sm:$0xff]  ;;  %v317_v30 = vld [vmem:[%s1338_s4] sm:$0xff] }
  0x15   :  { %1060 = vmatprep.subr.bf16.mxu1 %v1114_v11  ;;  %341 = vperm.xlu0 %1102, %v318_v28   ;;  %v954_v57 = vld [vmem:[%s1337_s3] ss:$0 sm:$0xff] }
  0x16   :  { %v963_v62 = vld [vmem:[%s1339_s5] ss:$0 sm:$0xff]  ;;  %s1186_s5 = smov [#allocation5]  }
  0x17   :  { %1033 = vmatpush3.bf16.msra.mxu0 %v1108_v10  ;;  %v827_v9 = vld [vmem:[%s1340_s6] sm:$0x3]  ;;  %s917_s6 = sshll.u32 %s1186_s5, 4  ;;  %s918_s6 = int_to_ptr.vmem [resolvable:$true] %s917_s6 }
  0x18   :  { %1034 = vmatprep.subr.bf16.mxu0 %v1109_v12  ;;  %1061 = vmatpush3.bf16.msra.mxu1 %v1114_v11  ;;  %s1119_s20 = scalar_lea.vmem %s918_s6, 16  ;;  %s1123_s21 = scalar_lea.vmem %s918_s6, 32 }
  0x19   :  { %1062 = vmatprep.subr.bf16.mxu1 %v1115_v13  ;;  %336 = vperm.xlu0 %1102, %v317_v30   ;;  %p1120_p0 = scmp.ne.s32.totalorder %s918_s6, %s1119_s20  ;;  %p1124_p1 = scmp.lt.s32.totalorder %s918_s6, %s918_s6 }
  0x1a   :  { %p1125_p2 = scmp.lt.s32.totalorder %s1123_s21, %s1119_s20 }
  0x1b   :  { %1035 = vmatpush3.bf16.msra.mxu0 %v1109_v12 }
  0x1c   :  { %1036 = vmatprep.subr.bf16.mxu0 %v1110_v14  ;;  %1063 = vmatpush3.bf16.msra.mxu1 %v1115_v13  ;;  %p1126_p3 = por %p1125_p2, %p1124_p1 }
  0x1d   :  { %1064 = vmatprep.subr.bf16.mxu1 %v1116_v15 }
  0x1e   :  { %p1127_p4 = pnand %p1126_p3, %p1120_p0 }
  0x1f   :  { %1037 = vmatpush3.bf16.msra.mxu0 %v1110_v14 }
  0x20   :  { %1065 = vmatpush3.bf16.msra.mxu1 %v1116_v15  ;;  %1086 = vmatprep.subr.mxu0 %v1184_v55 }
  0x21   :  { %1066 = vmatprep.subr.bf16.mxu1 %v1117_v26 }
  0x22   :  { %1039 = vmatmul.mubr.bf16.vlgmr.msra.gmra.mxu0 %v74_v16 }
  0x23   :  { %1042 = vmatprep.mubr.bf16.mxu0 %v75_v18 }
  0x24   :  { %1067 = vmatpush3.bf16.msra.mxu1 %v1117_v26 }
  0x25   :  { %1068 = vmatprep.subr.bf16.mxu1 %v1118_v27 }
  0x28   :  { %1069 = vmatpush3.bf16.msra.mxu1 %v1118_v27 }
  0x2a   :  { %1043 = vmatmul.mubr.bf16.gmra.mxu0 %v76_v19 }
  0x2b   :  { %1046 = vmatprep.mubr.bf16.mxu0 %v77_v21 }
  0x32   :  { %1047 = vmatmul.mubr.bf16.gmra.mxu0 %v78_v22 }
  0x33   :  { %1050 = vmatprep.mubr.bf16.mxu0 %v79_v24 }
  0x3a   :  { %1051 = vmatmul.mubr.bf16.gmra.mxu0 %v80_v25 }
  0x3b   :  { %1090 = vmatprep.mubr.msk.f32.mxu0 %vm1185_vm0, %v1184_v55 }
  0x90   :  { %v342_v56 = vpop.permute.xlu0 %341 }
  0x91   :  { %v421_v1 = vmul.f32 %v954_v57, %v342_v56 }
  0x94   :  { %v337_v58 = vpop.permute.xlu0 %336 }
  0x95   :  { %v420_v59 = vmul.f32 %v954_v57, %v337_v58 }
  0xe2   :  { %v1040_v31 = vpop.f32.mrf.mxu0 }
  0xe4   :  { %v179_v32 = vpop.f32.mrf.mxu0 }
  0xe6   :  { %v1041_v33 = vpop.f32.mrf.mxu0 }
  0xe7   :  { %v294_v36 = vpack.c.bf16 %v1041_v33, %v1040_v31 }
  0xe8   :  { %v182_v34 = vpop.f32.mrf.mxu0 }
  0xe9   :  { %v293_v35 = vpack.c.bf16 %v182_v34, %v179_v32 }
  0xea   :  { %v1044_v37 = vpop.f32.mrf.mxu0 }
  0xeb   :  { %1070 = vmatprep.mubr.bf16.mxu1 %v293_v35 }
  0xec   :  { %1071 = vmatmul.mubr.bf16.vlgmr.msra.gmra.mxu1 %v294_v36  ;;  %v195_v38 = vpop.f32.mrf.mxu0 }
  0xee   :  { %v1045_v39 = vpop.f32.mrf.mxu0 }
  0xef   :  { %v296_v42 = vpack.c.bf16 %v1045_v39, %v1044_v37 }
  0xf0   :  { %v198_v40 = vpop.f32.mrf.mxu0 }
  0xf1   :  { %v295_v41 = vpack.c.bf16 %v198_v40, %v195_v38  ;;  %v1187_v38 = vmov 0.0|0.0  }
  0xf2   :  { %v1048_v43 = vpop.f32.mrf.mxu0  ;;  %v966_v39 = vcombine.low %v1187_v38, %v1187_v38  ;;  %v967_v40 = vcombine.high %v1187_v38, %v1187_v38 }
  0xf3   :  { %1074 = vmatprep.mubr.bf16.mxu1 %v295_v41 }
  0xf4   :  { %v211_v44 = vpop.f32.mrf.mxu0  ;;  %1075 = vmatmul.mubr.bf16.gmra.mxu1 %v296_v42 }
  0xf6   :  { %v1049_v45 = vpop.f32.mrf.mxu0 }
  0xf7   :  { %v298_v48 = vpack.c.bf16 %v1049_v45, %v1048_v43 }
  0xf8   :  { %v214_v46 = vpop.f32.mrf.mxu0 }
  0xf9   :  { %v297_v47 = vpack.c.bf16 %v214_v46, %v211_v44 }
  0xfa   :  { %v1052_v49 = vpop.f32.mrf.mxu0 }
  0xfb   :  { %1078 = vmatprep.mubr.bf16.mxu1 %v297_v47 }
  0xfc   :  { %v227_v50 = vpop.f32.mrf.mxu0  ;;  %1079 = vmatmul.mubr.bf16.gmra.mxu1 %v298_v48 }
  0xfe   :  { %v1053_v51 = vpop.f32.mrf.mxu0 }
  0xff   :  { %v300_v54 = vpack.c.bf16 %v1053_v51, %v1052_v49 }
 0x100   :  { %v230_v52 = vpop.f32.mrf.mxu0 }
 0x101   :  { %v299_v53 = vpack.c.bf16 %v230_v52, %v227_v50 }
 0x103   :  { %1082 = vmatprep.mubr.bf16.mxu1 %v299_v53 }
 0x104   :  { %1083 = vmatmul.mubr.bf16.gmra.mxu1 %v300_v54 }
 0x1ac   :  { %v1072_v60 = vpop.f32.mrf.mxu1 }
 0x1ae   :  { %v518_v61 = vpop.f32.mrf.mxu1 }
 0x1af   :  { %v519_v63 = vadd.f32 %v518_v61, %v420_v59 }
 0x1b0   :  { %v1073_v0 = vpop.f32.mrf.mxu1 }
 0x1b1   :  { %v588_v2 = vadd.f32 %v963_v62, %v519_v63 }
 0x1b2   :  { %v521_v3 = vpop.f32.mrf.mxu1 }
 0x1b3   :  { %v522_v4 = vadd.f32 %v521_v3, %v421_v1  ;;  %v604_v5 = vmax.f32 %v588_v2, 0.0 }
 0x1b4   :  { %v1076_v26 = vpop.f32.mrf.mxu1 }
 0x1b5   :  { %v589_v6 = vadd.f32 %v963_v62, %v522_v4  ;;  %v789_v11 = vmul.f32 %v604_v5, %v604_v5 }
 0x1b6   :  { %v534_v27 = vpop.f32.mrf.mxu1 }
 0x1b7   :  { %v605_v7 = vmax.f32 %v589_v6, 0.0 }
 0x1b8   :  { %v1077_v28 = vpop.f32.mrf.mxu1 }
 0x1b9   :  { %v985_v8 = vpack.c.bf16 %v605_v7, %v604_v5  ;;  %1087 = vmatpush3.msra.mxu0 %v605_v7  ;;  %v767_v10 = vadd.f32 %v605_v7, %v604_v5  ;;  %v790_v12 = vmul.f32 %v605_v7, %v605_v7 }
 0x1ba   :  { %1088 = vmatprep.subr.mxu0 %v1184_v55  ;;  %v537_v29 = vpop.f32.mrf.mxu1 }
 0x1bb   :  { %986 = vst [vmem:[#allocation3] sm:$0xff] %v985_v8   ;;  %1089 = vmatpush3.msra.mxu0 %v604_v5  ;;  %v782_v13 = vrot.slane %v767_v10, 4  ;;  %v805_v14 = vadd.f32 %v790_v12, %v789_v11 }
 0x1bc   :  { %1091 = vmatmul.mubr.f32.vlgmr.msra.gmra.mxu0 %v827_v9  ;;  %v1080_v30 = vpop.f32.mrf.mxu1 }
 0x1bd   :  { %v783_v15 = vadd.f32 %v782_v13, %v767_v10  ;;  %v820_v16 = vrot.slane %v805_v14, 4 }
 0x1be   :  { %v550_v31 = vpop.f32.mrf.mxu1 }
 0x1bf   :  { %v784_v17 = vrot.slane %v783_v15, 2  ;;  %v821_v18 = vadd.f32 %v820_v16, %v805_v14 }
 0x1c0   :  { %v1081_v32 = vpop.f32.mrf.mxu1 }
 0x1c1   :  { %v785_v19 = vadd.f32 %v784_v17, %v783_v15  ;;  %v822_v20 = vrot.slane %v821_v18, 2 }
 0x1c2   :  { %v553_v33 = vpop.f32.mrf.mxu1 }
 0x1c3   :  { %v786_v21 = vrot.slane %v785_v19, 1  ;;  %v823_v22 = vadd.f32 %v822_v20, %v821_v18 }
 0x1c4   :  { %v1084_v34 = vpop.f32.mrf.mxu1 }
 0x1c5   :  { %v787_v23 = vadd.f32 %v786_v21, %v785_v19  ;;  %v824_v24 = vrot.slane %v823_v22, 1 }
 0x1c6   :  { %v566_v35 = vpop.f32.mrf.mxu1 }
 0x1c7   :  { %788 = vst [vmem:[#allocation5] sm:$0x1] %v787_v23  ;;  %v825_v25 = vadd.f32 %v824_v24, %v823_v22 }
 0x1c8   :  { %v1085_v36 = vpop.f32.mrf.mxu1 }
 0x1c9   :  { %826 = vst [vmem:[#allocation7] sm:$0x1] %v825_v25 }
 0x1ca   :  { %v569_v37 = vpop.f32.mrf.mxu1 }
 0x1cb   :  { %1130 = shalt.err (!%p1127_p4)
}
 0x1cc   :  { %920 = dma.vmem_to_hbm [thread:$0]  %s918_s6, 16, %s1342_s8, [#allocation6]   ;;  %753 = vst [vmem:[#allocation3 + $0x8] sm:$0xf] %v966_v39  ;;  %754 = vst [vmem:[#allocation3 + $0xc] sm:$0xf] %v967_v40 }
 0x1cd   :  { %755 = vst [vmem:[#allocation3 + $0x10] sm:$0xf] %v966_v39  ;;  %756 = vst [vmem:[#allocation3 + $0x14] sm:$0xf] %v967_v40  ;;  %s1139_s24 = scalar_lea.vmem %s905_s19, 1024  ;;  %p1144_p6 = scmp.lt.s32.totalorder %s905_s19, %s905_s19 }
 0x1ce   :  { %757 = vst [vmem:[#allocation3 + $0x18] sm:$0xf] %v966_v39  ;;  %758 = vst [vmem:[#allocation3 + $0x1c] sm:$0xf] %v967_v40  ;;  %p1140_p5 = scmp.ne.s32.totalorder %s905_s19, %s1139_s24  ;;  %p1145_p7 = scmp.lt.s32.totalorder %s1139_s24, %s1139_s24 }
 0x1cf   :  { %759 = vst [vmem:[#allocation3 + $0x20] sm:$0xf] %v966_v39  ;;  %760 = vst [vmem:[#allocation3 + $0x24] sm:$0xf] %v967_v40 }
 0x1d0   :  { %761 = vst [vmem:[#allocation3 + $0x28] sm:$0xf] %v966_v39  ;;  %762 = vst [vmem:[#allocation3 + $0x2c] sm:$0xf] %v967_v40  ;;  %p1146_p8 = por %p1145_p7, %p1144_p6 }
 0x1d1   :  { %763 = vst [vmem:[#allocation3 + $0x30] sm:$0xf] %v966_v39  ;;  %764 = vst [vmem:[#allocation3 + $0x34] sm:$0xf] %v967_v40 }
 0x1d2   :  { %765 = vst [vmem:[#allocation3 + $0x38] sm:$0xf] %v966_v39  ;;  %766 = vst [vmem:[#allocation3 + $0x3c] sm:$0xf] %v967_v40  ;;  %p1147_p9 = pnand %p1146_p8, %p1140_p5 }
 0x1d4   :  { %1150 = shalt.err (!%p1147_p9)
}
 0x1d5   :  { %s1189_s8 = smov 64   ;;  %s1190_s1 = smov 4  }
 0x1d6   :  { %910 = dma.vmem_to_hbm [thread:$0]  %s905_s19, 1024, %s1341_s7, [#allocation4], %s1189_s8, %s1189_s8, %s1190_s1  }
 0x1d7   :  { %s1191_s27 = smov [#allocation7]  }
 0x1d8   :  { %s927_s28 = sshll.u32 %s1191_s27, 4  ;;  %s928_s28 = int_to_ptr.vmem [resolvable:$true] %s927_s28 }
 0x1d9   :  { %s1159_s29 = scalar_lea.vmem %s928_s28, 16  ;;  %s1163_s30 = scalar_lea.vmem %s928_s28, 32 }
 0x1da   :  { %p1160_p10 = scmp.ne.s32.totalorder %s928_s28, %s1159_s29  ;;  %p1164_p11 = scmp.lt.s32.totalorder %s928_s28, %s928_s28 }
 0x1db   :  { %p1165_p12 = scmp.lt.s32.totalorder %s1163_s30, %s1159_s29 }
 0x1dd   :  { %p1166_p13 = por %p1165_p12, %p1164_p11 }
 0x1df   :  { %p1167_p0 = pnand %p1166_p13, %p1160_p10 }
 0x1e1   :  { %1170 = shalt.err (!%p1167_p0)
}
 0x1e2   :  { %930 = dma.vmem_to_hbm [thread:$0]  %s928_s28, 16, %s1343_s9, [#allocation6]  }
 0x27c   :  { %v894_v41 = vpop.f32.mrf.mxu0 }
 0x27d   :  { %898 = vst [vmem:[%s1344_s10] sm:$0x3] %v894_v41 }
 0x27e   :  { %v1092_v42 = vpop.f32.mrf.mxu0 }
 0x27f   :  { %1179 = dma.done.wait [#allocation4], 1024  }
 0x280   :  { %1180 = vsyncadd [#allocation4], 4294966272 }
 0x281   :  { %1181 = dma.done.wait [#allocation6], 32  }
 0x282   :  { %1182 = vsyncadd [#allocation6], 4294967264 }
 0x283   :  { %944 = vsyncpa [#allocation4], 1 }
 0x284   :  { %945 = vsyncpa [#allocation6], 1 }

// kernel: res_gcn_adj_forward.5
= control target key start
LH: loop header
LB: loop body
LE: loop exit
PB: predicated region body
PF: predicated region fallthrough
CT: control target
= control target key end

     0   :  { %v989_v28 = vmov 0   ;;  %v990_v55 = vmov 0.0|0.0   ;;  %s1159_s1 = inlined_call_operand.vmem [shape: bf16[128,128], index: 1, kind: input, shape index: {}]   ;;  %s1160_s0 = inlined_call_operand.vmem [shape: s8[128,128], index: 0, kind: input, shape index: {}]   ;;  %s1161_s2 = inlined_call_operand.vmem [shape: bf16[128,128], index: 2, kind: input, shape index: {}]   ;;  %s1162_s4 = inlined_call_operand.vmem [shape: f32[128,1], index: 4, kind: input, shape index: {}]   ;;  %s1163_s6 = inlined_call_operand.vmem [shape: bf16[128,128], index: 6, kind: output, shape index: {0}]   ;;  %s1164_s3 = inlined_call_operand.vmem [shape: f32[1,128], index: 3, kind: input, shape index: {}]   ;;  %s1165_s5 = inlined_call_operand.vmem [shape: f32[1,128], index: 5, kind: input, shape index: {}]   ;;  %s1166_s7 = inlined_call_operand.vmem [shape: f32[1,1,128], index: 7, kind: output, shape index: {1}]   ;;  %s1167_s8 = inlined_call_operand.vmem [shape: f32[1,1,128], index: 8, kind: output, shape index: {2}]  }
   0x1   :  { %v973_v0 = vld [vmem:[%s1159_s1 + $0x38] sm:$0xff]   ;;  %v974_v1 = vld [vmem:[%s1159_s1 + $0x30] sm:$0xff]   ;;  %v975_v2 = vld [vmem:[%s1159_s1 + $0x28] sm:$0xff]   ;;  %972 = vset.pattern.permute.xlu0 %v989_v28  ;;  %v853_v56 = vcombine.low %v990_v55, %v990_v55  ;;  %v854_v57 = vcombine.high %v990_v55, %v990_v55 }
   0x2   :  { %906 = vmatprep.subr.bf16.mxu0 %v973_v0  ;;  %v976_v3 = vld [vmem:[%s1159_s1 + $0x20] sm:$0xff]   ;;  %v981_v6 = vld [vmem:[%s1161_s2 + $0x38] sm:$0xff]   ;;  %v982_v7 = vld [vmem:[%s1161_s2 + $0x30] sm:$0xff]  }
   0x3   :  { %907 = vmatpush3.bf16.msra.mxu0 %v973_v0  ;;  %v63_v4 = vld [vmem:[%s1160_s0] sm:$0xff]  ;;  %v977_v8 = vld [vmem:[%s1159_s1 + $0x18] sm:$0xff]   ;;  %938 = vmatprep.subr.bf16.mxu1 %v981_v6  ;;  %v983_v9 = vld [vmem:[%s1161_s2 + $0x28] sm:$0xff]   ;;  %747 = vst [vmem:[%s1163_s6 + $0x8] sm:$0xf] %v853_v56 }
   0x4   :  { %908 = vmatprep.subr.bf16.mxu0 %v974_v1  ;;  %v67_v5 = vunpack.c.l.s8.bf16 %v63_v4  ;;  %939 = vmatpush3.bf16.msra.mxu1 %v981_v6  ;;  %v978_v10 = vld [vmem:[%s1159_s1 + $0x10] sm:$0xff]   ;;  %v984_v11 = vld [vmem:[%s1161_s2 + $0x20] sm:$0xff]   ;;  %v979_v12 = vld [vmem:[%s1159_s1 + $0x8] sm:$0xff]   ;;  %v68_v17 = vunpack.c.h.s8.bf16 %v63_v4  ;;  %748 = vst [vmem:[%s1163_s6 + $0xc] sm:$0xf] %v854_v57 }
   0x5   :  { %940 = vmatprep.subr.bf16.mxu1 %v982_v7  ;;  %v985_v13 = vld [vmem:[%s1161_s2 + $0x18] sm:$0xff]   ;;  %v980_v14 = vld [vmem:[%s1159_s1] sm:$0xff]   ;;  %v986_v15 = vld [vmem:[%s1161_s2 + $0x10] sm:$0xff]   ;;  %749 = vst [vmem:[%s1163_s6 + $0x10] sm:$0xf] %v853_v56 }
   0x6   :  { %922 = vmatprep.mubr.bf16.mxu0 %v67_v5  ;;  %v64_v16 = vld [vmem:[%s1160_s0 + $0x8] sm:$0xff]  ;;  %v65_v19 = vld [vmem:[%s1160_s0 + $0x10] sm:$0xff]  ;;  %v66_v22 = vld [vmem:[%s1160_s0 + $0x18] sm:$0xff]  ;;  %750 = vst [vmem:[%s1163_s6 + $0x14] sm:$0xf] %v854_v57 }
   0x7   :  { %909 = vmatpush3.bf16.msra.mxu0 %v974_v1  ;;  %v69_v18 = vunpack.c.l.s8.bf16 %v64_v16  ;;  %v70_v20 = vunpack.c.h.s8.bf16 %v64_v16  ;;  %v71_v21 = vunpack.c.l.s8.bf16 %v65_v19  ;;  %v72_v23 = vunpack.c.h.s8.bf16 %v65_v19  ;;  %v987_v26 = vld [vmem:[%s1161_s2 + $0x8] sm:$0xff]   ;;  %v988_v27 = vld [vmem:[%s1161_s2] sm:$0xff]   ;;  %751 = vst [vmem:[%s1163_s6 + $0x18] sm:$0xf] %v853_v56  ;;  %752 = vst [vmem:[%s1163_s6 + $0x1c] sm:$0xf] %v854_v57 }
   0x8   :  { %910 = vmatprep.subr.bf16.mxu0 %v975_v2  ;;  %941 = vmatpush3.bf16.msra.mxu1 %v982_v7  ;;  %v73_v24 = vunpack.c.l.s8.bf16 %v66_v22  ;;  %v74_v25 = vunpack.c.h.s8.bf16 %v66_v22  ;;  %v311_v29 = vld [vmem:[%s1162_s4] sm:$0xff]  ;;  %v312_v30 = vld [vmem:[%s1162_s4 + $0x8] sm:$0xff]  ;;  %753 = vst [vmem:[%s1163_s6 + $0x20] sm:$0xf] %v853_v56  ;;  %754 = vst [vmem:[%s1163_s6 + $0x24] sm:$0xf] %v854_v57 }
   0x9   :  { %942 = vmatprep.subr.bf16.mxu1 %v983_v9  ;;  %330 = vperm.xlu0 %972, %v311_v29   ;;  %755 = vst [vmem:[%s1163_s6 + $0x28] sm:$0xf] %v853_v56  ;;  %756 = vst [vmem:[%s1163_s6 + $0x2c] sm:$0xf] %v854_v57  ;;  %v841_v59 = vld [vmem:[%s1164_s3] ss:$0 sm:$0xff] }
   0xa   :  { %757 = vst [vmem:[%s1163_s6 + $0x30] sm:$0xf] %v853_v56  ;;  %758 = vst [vmem:[%s1163_s6 + $0x34] sm:$0xf] %v854_v57  ;;  %v850_v0 = vld [vmem:[%s1165_s5] ss:$0 sm:$0xff] }
   0xb   :  { %911 = vmatpush3.bf16.msra.mxu0 %v975_v2  ;;  %759 = vst [vmem:[%s1163_s6 + $0x38] sm:$0xf] %v853_v56  ;;  %760 = vst [vmem:[%s1163_s6 + $0x3c] sm:$0xf] %v854_v57 }
   0xc   :  { %912 = vmatprep.subr.bf16.mxu0 %v976_v3  ;;  %943 = vmatpush3.bf16.msra.mxu1 %v983_v9 }
   0xd   :  { %944 = vmatprep.subr.bf16.mxu1 %v984_v11  ;;  %335 = vperm.xlu0 %972, %v312_v30  }
   0xf   :  { %913 = vmatpush3.bf16.msra.mxu0 %v976_v3 }
  0x10   :  { %914 = vmatprep.subr.bf16.mxu0 %v977_v8  ;;  %945 = vmatpush3.bf16.msra.mxu1 %v984_v11 }
  0x11   :  { %946 = vmatprep.subr.bf16.mxu1 %v985_v13 }
  0x13   :  { %915 = vmatpush3.bf16.msra.mxu0 %v977_v8 }
  0x14   :  { %916 = vmatprep.subr.bf16.mxu0 %v978_v10  ;;  %947 = vmatpush3.bf16.msra.mxu1 %v985_v13 }
  0x15   :  { %948 = vmatprep.subr.bf16.mxu1 %v986_v15 }
  0x17   :  { %917 = vmatpush3.bf16.msra.mxu0 %v978_v10 }
  0x18   :  { %918 = vmatprep.subr.bf16.mxu0 %v979_v12  ;;  %949 = vmatpush3.bf16.msra.mxu1 %v986_v15 }
  0x19   :  { %950 = vmatprep.subr.bf16.mxu1 %v987_v26 }
  0x1b   :  { %919 = vmatpush3.bf16.msra.mxu0 %v979_v12 }
  0x1c   :  { %920 = vmatprep.subr.bf16.mxu0 %v980_v14  ;;  %951 = vmatpush3.bf16.msra.mxu1 %v987_v26 }
  0x1d   :  { %952 = vmatprep.subr.bf16.mxu1 %v988_v27 }
  0x1f   :  { %921 = vmatpush3.bf16.msra.mxu0 %v980_v14 }
  0x20   :  { %953 = vmatpush3.bf16.msra.mxu1 %v988_v27 }
  0x22   :  { %923 = vmatmul.mubr.bf16.vlgmr.msra.gmra.mxu0 %v68_v17 }
  0x23   :  { %926 = vmatprep.mubr.bf16.mxu0 %v69_v18 }
  0x2a   :  { %927 = vmatmul.mubr.bf16.gmra.mxu0 %v70_v20 }
  0x2b   :  { %930 = vmatprep.mubr.bf16.mxu0 %v71_v21 }
  0x32   :  { %931 = vmatmul.mubr.bf16.gmra.mxu0 %v72_v23 }
  0x33   :  { %934 = vmatprep.mubr.bf16.mxu0 %v73_v24 }
  0x3a   :  { %935 = vmatmul.mubr.bf16.gmra.mxu0 %v74_v25 }
  0x84   :  { %v331_v58 = vpop.permute.xlu0 %330 }
  0x85   :  { %v414_v60 = vmul.f32 %v841_v59, %v331_v58 }
  0x88   :  { %v336_v62 = vpop.permute.xlu0 %335 }
  0x89   :  { %v415_v3 = vmul.f32 %v841_v59, %v336_v62 }
  0xe2   :  { %v924_v31 = vpop.f32.mrf.mxu0 }
  0xe4   :  { %v173_v32 = vpop.f32.mrf.mxu0 }
  0xe6   :  { %v925_v33 = vpop.f32.mrf.mxu0 }
  0xe7   :  { %v288_v36 = vpack.c.bf16 %v925_v33, %v924_v31 }
  0xe8   :  { %v176_v34 = vpop.f32.mrf.mxu0 }
  0xe9   :  { %v287_v35 = vpack.c.bf16 %v176_v34, %v173_v32 }
  0xea   :  { %v928_v37 = vpop.f32.mrf.mxu0 }
  0xeb   :  { %954 = vmatprep.mubr.bf16.mxu1 %v287_v35 }
  0xec   :  { %v189_v38 = vpop.f32.mrf.mxu0  ;;  %955 = vmatmul.mubr.bf16.vlgmr.msra.gmra.mxu1 %v288_v36 }
  0xee   :  { %v929_v39 = vpop.f32.mrf.mxu0 }
  0xef   :  { %v290_v42 = vpack.c.bf16 %v929_v39, %v928_v37 }
  0xf0   :  { %v192_v40 = vpop.f32.mrf.mxu0 }
  0xf1   :  { %v289_v41 = vpack.c.bf16 %v192_v40, %v189_v38 }
  0xf2   :  { %v932_v43 = vpop.f32.mrf.mxu0 }
  0xf3   :  { %958 = vmatprep.mubr.bf16.mxu1 %v289_v41 }
  0xf4   :  { %v205_v44 = vpop.f32.mrf.mxu0  ;;  %959 = vmatmul.mubr.bf16.gmra.mxu1 %v290_v42 }
  0xf6   :  { %v933_v45 = vpop.f32.mrf.mxu0 }
  0xf7   :  { %v292_v48 = vpack.c.bf16 %v933_v45, %v932_v43 }
  0xf8   :  { %v208_v46 = vpop.f32.mrf.mxu0 }
  0xf9   :  { %v291_v47 = vpack.c.bf16 %v208_v46, %v205_v44 }
  0xfa   :  { %v936_v49 = vpop.f32.mrf.mxu0 }
  0xfb   :  { %962 = vmatprep.mubr.bf16.mxu1 %v291_v47 }
  0xfc   :  { %v221_v50 = vpop.f32.mrf.mxu0  ;;  %963 = vmatmul.mubr.bf16.gmra.mxu1 %v292_v48 }
  0xfe   :  { %v937_v51 = vpop.f32.mrf.mxu0 }
  0xff   :  { %v294_v54 = vpack.c.bf16 %v937_v51, %v936_v49 }
 0x100   :  { %v224_v52 = vpop.f32.mrf.mxu0 }
 0x101   :  { %v293_v53 = vpack.c.bf16 %v224_v52, %v221_v50 }
 0x103   :  { %966 = vmatprep.mubr.bf16.mxu1 %v293_v53 }
 0x104   :  { %967 = vmatmul.mubr.bf16.gmra.mxu1 %v294_v54 }
 0x1ac   :  { %v956_v61 = vpop.f32.mrf.mxu1 }
 0x1ae   :  { %v512_v63 = vpop.f32.mrf.mxu1 }
 0x1af   :  { %v513_v1 = vadd.f32 %v512_v63, %v414_v60 }
 0x1b0   :  { %v957_v2 = vpop.f32.mrf.mxu1 }
 0x1b1   :  { %v582_v4 = vadd.f32 %v850_v0, %v513_v1 }
 0x1b2   :  { %v515_v5 = vpop.f32.mrf.mxu1 }
 0x1b3   :  { %v516_v6 = vadd.f32 %v515_v5, %v415_v3  ;;  %v598_v8 = vmax.f32 %v582_v4, 0.0 }
 0x1b4   :  { %v960_v7 = vpop.f32.mrf.mxu1 }
 0x1b5   :  { %v583_v9 = vadd.f32 %v850_v0, %v516_v6  ;;  %v783_v13 = vmul.f32 %v598_v8, %v598_v8 }
 0x1b6   :  { %v528_v10 = vpop.f32.mrf.mxu1 }
 0x1b7   :  { %v599_v11 = vmax.f32 %v583_v9, 0.0 }
 0x1b8   :  { %v961_v12 = vpop.f32.mrf.mxu1 }
 0x1b9   :  { %v872_v14 = vpack.c.bf16 %v599_v11, %v598_v8  ;;  %v761_v15 = vadd.f32 %v599_v11, %v598_v8  ;;  %v784_v16 = vmul.f32 %v599_v11, %v599_v11 }
 0x1ba   :  { %v531_v17 = vpop.f32.mrf.mxu1 }
 0x1bb   :  { %873 = vst [vmem:[%s1163_s6] sm:$0xff] %v872_v14   ;;  %v776_v18 = vrot.slane %v761_v15, 4  ;;  %v799_v19 = vadd.f32 %v784_v16, %v783_v13 }
 0x1bc   :  { %v964_v20 = vpop.f32.mrf.mxu1 }
 0x1bd   :  { %v777_v21 = vadd.f32 %v776_v18, %v761_v15  ;;  %v814_v22 = vrot.slane %v799_v19, 4 }
 0x1be   :  { %v544_v23 = vpop.f32.mrf.mxu1 }
 0x1bf   :  { %v778_v24 = vrot.slane %v777_v21, 2  ;;  %v815_v25 = vadd.f32 %v814_v22, %v799_v19 }
 0x1c0   :  { %v965_v26 = vpop.f32.mrf.mxu1 }
 0x1c1   :  { %v779_v27 = vadd.f32 %v778_v24, %v777_v21  ;;  %v816_v28 = vrot.slane %v815_v25, 2 }
 0x1c2   :  { %v547_v29 = vpop.f32.mrf.mxu1 }
 0x1c3   :  { %v780_v30 = vrot.slane %v779_v27, 1  ;;  %v817_v31 = vadd.f32 %v816_v28, %v815_v25 }
 0x1c4   :  { %v968_v32 = vpop.f32.mrf.mxu1 }
 0x1c5   :  { %v781_v33 = vadd.f32 %v780_v30, %v779_v27  ;;  %v818_v34 = vrot.slane %v817_v31, 1 }
 0x1c6   :  { %v560_v35 = vpop.f32.mrf.mxu1 }
 0x1c7   :  { %782 = vst [vmem:[%s1166_s7] sm:$0x1] %v781_v33  ;;  %v819_v36 = vadd.f32 %v818_v34, %v817_v31 }
 0x1c8   :  { %v969_v37 = vpop.f32.mrf.mxu1 }
 0x1c9   :  { %820 = vst [vmem:[%s1167_s8] sm:$0x1] %v819_v36 }
 0x1ca   :  { %v563_v38 = vpop.f32.mrf.mxu1 }

</bundles_post_ra>
